<compile_context>
chip_gen: v5e
topology: v5e:2x2
jax: 0.10.0
libtpu: 0.0.40
codegen_flags: <defaults>
</compile_context>

<pallas_src>
import jax
import jax.numpy as jnp
from jax import lax
from jax.experimental import pallas as pl
from jax.experimental.pallas import tpu as pltpu

NEG_BIG = -1.0e9


def bilstm_pool_kernel(x_ref, len_ref, wih_ref, b_ref, whhf_ref, whhb_ref,
                       h0f_ref, c0f_ref, h0b_ref, c0b_ref,
                       out_ref, gx_ref):
    TB, _ = x_ref.shape                     # (T*BT, E)
    BT, H = h0f_ref.shape                   # batch tile, hidden
    T = TB // BT
    G4 = 4 * H

    # ---- one big MXU matmul: input projection, both directions, all t ----
    gx_ref[...] = jnp.dot(x_ref[...], wih_ref[...],
                          preferred_element_type=jnp.float32) + b_ref[...]

    # ---- loop-invariant loads hoisted out of the recurrence ----
    whh_f = whhf_ref[...]                   # (H, 4H)
    whh_b = whhb_ref[...]                   # (H, 4H)
    lengths = len_ref[...]                  # (BT, 1) int32

    init_m = jnp.full((BT, H), NEG_BIG, dtype=jnp.float32)

    def gates(pre, c):
        """torch LSTM cell nonlinearity; gate order i, f, g, o."""
        i = jax.nn.sigmoid(pre[:, 0 * H:1 * H])
        f = jax.nn.sigmoid(pre[:, 1 * H:2 * H])
        g = jnp.tanh(pre[:, 2 * H:3 * H])
        o = jax.nn.sigmoid(pre[:, 3 * H:4 * H])
        c_new = f * c + i * g
        h_new = o * jnp.tanh(c_new)
        return h_new, c_new

    def step(s, carry):
        hf, cf, mf, hb, cb, mb = carry
        tf = s                              # forward time index
        tb = T - 1 - s                      # backward time index
        rowf = pl.multiple_of(tf * BT, BT)
        rowb = pl.multiple_of(tb * BT, BT)

        # two independent recurrent matmuls (fwd & bwd interleaved for ILP);
        # lane slices :G4 / G4: sit on 128-lane boundaries.
        pre_f = gx_ref[pl.ds(rowf, BT), :G4] + jnp.dot(
            hf, whh_f, preferred_element_type=jnp.float32)
        pre_b = gx_ref[pl.ds(rowb, BT), G4:] + jnp.dot(
            hb, whh_b, preferred_element_type=jnp.float32)

        hf_new, cf_new = gates(pre_f, cf)
        hb_new, cb_new = gates(pre_b, cb)

        valid_f = tf < lengths              # (BT, 1) bool
        valid_b = tb < lengths

        # pack_padded_sequence semantics: padded steps contribute 0 -> -1e9,
        # valid steps contribute h_new (with exact-zero entries -> -1e9, like
        # `output[output == 0] = -1e9`).
        out_f = jnp.where(valid_f & (hf_new != 0.0), hf_new, NEG_BIG)
        out_b = jnp.where(valid_b & (hb_new != 0.0), hb_new, NEG_BIG)
        mf = jnp.maximum(mf, out_f)
        mb = jnp.maximum(mb, out_b)

        # state only advances inside the valid window (frozen past length);
        # for the backward direction this makes (h0_b, c0_b) apply at t=len-1.
        hf = jnp.where(valid_f, hf_new, hf)
        cf = jnp.where(valid_f, cf_new, cf)
        hb = jnp.where(valid_b, hb_new, hb)
        cb = jnp.where(valid_b, cb_new, cb)
        return hf, cf, mf, hb, cb, mb

    carry0 = (h0f_ref[...], c0f_ref[...], init_m,
              h0b_ref[...], c0b_ref[...], init_m)
    unroll = True if T <= 64 else 8
    _, _, m_fwd, _, _, m_bwd = lax.fori_loop(0, T, step, carry0, unroll=unroll)

    # lane-dense split stores (no lane-axis concatenate)
    out_ref[:, :H] = m_fwd
    out_ref[:, H:] = m_bwd


def bilstm_pool(tokens, lengths, params, *, batch_tile=8):
    """tokens: (B, T) int32, lengths: (B,) int32 -> pooled (B, 2H) f32."""
    emb_table = params["embeddings"]
    B, T = tokens.shape
    E = emb_table.shape[-1]
    H = params["h0"].shape[-1]

    BT = batch_tile
    B_pad = ((B + BT - 1) // BT) * BT
    nB = B_pad // BT

    # --- pad batch to a sublane-full tile; padded rows have length 0 ---
    tok_p = jnp.pad(tokens.astype(jnp.int32), ((0, B_pad - B), (0, 0)))
    len_p = jnp.pad(lengths.astype(jnp.int32), (0, B_pad - B))
    len2d = len_p.reshape(B_pad, 1)

    # --- gather embeddings directly in (batch-tile, time-major) layout ---
    # row index within a tile: r = t*BT + j  <->  batch element g*BT + j, time t
    idx = tok_p.reshape(nB, BT, T).transpose(0, 2, 1).reshape(nB, T * BT)
    x = jnp.take(emb_table, idx, axis=0)               # (nB, T*BT, E)

    # --- torch layout: weight_ih (4H, E), weight_hh (4H, H) -> pre-transpose,
    #     concat both directions for one big input-projection matmul ---
    wih_all = jnp.concatenate([params["w_ih_f"].T, params["w_ih_b"].T], axis=1)  # (E, 8H)
    b_all = jnp.concatenate([params["b_ih_f"] + params["b_hh_f"],
                             params["b_ih_b"] + params["b_hh_b"]]).reshape(1, 8 * H)
    whh_f = params["w_hh_f"].T                          # (H, 4H)
    whh_b = params["w_hh_b"].T

    def pad_state(s):                                   # (B, H) -> (B_pad, H)
        return jnp.pad(s, ((0, B_pad - B), (0, 0)))

    h0f, h0b = pad_state(params["h0"][0]), pad_state(params["h0"][1])
    c0f, c0b = pad_state(params["c0"][0]), pad_state(params["c0"][1])

    out = pl.pallas_call(
        bilstm_pool_kernel,
        out_shape=jax.ShapeDtypeStruct((B_pad, 2 * H), jnp.float32),
        grid=(nB,),
        in_specs=[
            pl.BlockSpec((None, T * BT, E), lambda g: (g, 0, 0)),   # x tile
            pl.BlockSpec((BT, 1), lambda g: (g, 0)),                # lengths
            pl.BlockSpec((E, 8 * H), lambda g: (0, 0)),             # W_ih both dirs
            pl.BlockSpec((1, 8 * H), lambda g: (0, 0)),             # folded biases
            pl.BlockSpec((H, 4 * H), lambda g: (0, 0)),             # W_hh fwd
            pl.BlockSpec((H, 4 * H), lambda g: (0, 0)),             # W_hh bwd
            pl.BlockSpec((BT, H), lambda g: (g, 0)),                # h0 fwd
            pl.BlockSpec((BT, H), lambda g: (g, 0)),                # c0 fwd
            pl.BlockSpec((BT, H), lambda g: (g, 0)),                # h0 bwd
            pl.BlockSpec((BT, H), lambda g: (g, 0)),                # c0 bwd
        ],
        out_specs=pl.BlockSpec((BT, 2 * H), lambda g: (g, 0)),
        scratch_shapes=[
            pltpu.VMEM((T * BT, 8 * H), jnp.float32),   # gates_x, both dirs
        ],
        compiler_params=pltpu.CompilerParams(
            dimension_semantics=("parallel",),          # batch tiles -> v7x TCs
            vmem_limit_bytes=32 * 1024 * 1024,          # safe on v5e/v6e/v7x
        ),
    )(x, len2d, wih_all, b_all, whh_f, whh_b, h0f, c0f, h0b, c0b)

    return out[:B]


def bilstm_pool_ref(tokens, lengths, params):
    """Pure-JAX reference mirroring the PyTorch forward (for validation)."""
    emb_table = params["embeddings"]
    B, T = tokens.shape
    x = jnp.take(emb_table, tokens, axis=0)             # (B, T, E)

    def cell(x_t, h, c, w_ih, w_hh, b_ih, b_hh):
        gates = x_t @ w_ih.T + b_ih + h @ w_hh.T + b_hh
        i, f, g, o = jnp.split(gates, 4, axis=-1)
        c_new = jax.nn.sigmoid(f) * c + jax.nn.sigmoid(i) * jnp.tanh(g)
        h_new = jax.nn.sigmoid(o) * jnp.tanh(c_new)
        return h_new, c_new

    lens = lengths.astype(jnp.int32)[:, None]

    # forward
    h, c = params["h0"][0], params["c0"][0]
    outs_f = []
    for t in range(T):
        h_new, c_new = cell(x[:, t], h, c, params["w_ih_f"], params["w_hh_f"],
                            params["b_ih_f"], params["b_hh_f"])
        valid = t < lens
        outs_f.append(jnp.where(valid, h_new, 0.0))
        h = jnp.where(valid, h_new, h)
        c = jnp.where(valid, c_new, c)
    # backward (packed semantics)
    h, c = params["h0"][1], params["c0"][1]
    outs_b = [None] * T
    for t in range(T - 1, -1, -1):
        h_new, c_new = cell(x[:, t], h, c, params["w_ih_b"], params["w_hh_b"],
                            params["b_ih_b"], params["b_hh_b"])
        valid = t < lens
        h = jnp.where(valid, h_new, h)
        c = jnp.where(valid, c_new, c)
        outs_b[t] = jnp.where(valid, h, 0.0)

    output = jnp.concatenate(
        [jnp.stack(outs_f, axis=1), jnp.stack(outs_b, axis=1)], axis=-1)
    output = jnp.where(output == 0.0, NEG_BIG, output)
    return jnp.max(output, axis=1)


if __name__ == "__main__":
    # Small shapes consistent with the module's forward.
    VOCAB, E, H = 32, 16, 32
    B, T = 2, 8

    key = jax.random.PRNGKey(0)
    ks = jax.random.split(key, 12)
    scale = 1.0 / jnp.sqrt(H)

    params = {
        "embeddings": jax.random.normal(ks[0], (VOCAB, E), jnp.float32),
        "w_ih_f": jax.random.uniform(ks[1], (4 * H, E), jnp.float32, -scale, scale),
        "w_hh_f": jax.random.uniform(ks[2], (4 * H, H), jnp.float32, -scale, scale),
        "b_ih_f": jax.random.uniform(ks[3], (4 * H,), jnp.float32, -scale, scale),
        "b_hh_f": jax.random.uniform(ks[4], (4 * H,), jnp.float32, -scale, scale),
        "w_ih_b": jax.random.uniform(ks[5], (4 * H, E), jnp.float32, -scale, scale),
        "w_hh_b": jax.random.uniform(ks[6], (4 * H, H), jnp.float32, -scale, scale),
        "b_ih_b": jax.random.uniform(ks[7], (4 * H,), jnp.float32, -scale, scale),
        "b_hh_b": jax.random.uniform(ks[8], (4 * H,), jnp.float32, -scale, scale),
        "h0": jax.random.normal(ks[9], (2, B, H), jnp.float32),
        "c0": jax.random.normal(ks[10], (2, B, H), jnp.float32),
    }

    tokens = jax.random.randint(ks[11], (B, T), 0, VOCAB, dtype=jnp.int32)
    lengths = jnp.array([T, 5], dtype=jnp.int32)   # padded second sequence

    pooled = jax.block_until_ready(bilstm_pool(tokens, lengths, params))
    ref = jax.block_until_ready(bilstm_pool_ref(tokens, lengths, params))

    assert pooled.shape == (B, 2 * H)
    assert jnp.allclose(pooled, ref, rtol=1e-4, atol=1e-4), (
        f"mismatch: max abs diff {jnp.max(jnp.abs(pooled - ref))}")
    print("KERNEL_OK")
</pallas_src>

<mosaic_0001>
module attributes {stable_mosaic.version = 11 : i64} {
  func.func @bilstm_pool_kernel(%arg0: i32, %arg1: memref<1x64x16xf32, #tpu.memory_space<vmem>>, %arg2: memref<8x1xi32, #tpu.memory_space<vmem>>, %arg3: memref<16x256xf32, #tpu.memory_space<vmem>>, %arg4: memref<1x256xf32, #tpu.memory_space<vmem>>, %arg5: memref<32x128xf32, #tpu.memory_space<vmem>>, %arg6: memref<32x128xf32, #tpu.memory_space<vmem>>, %arg7: memref<8x32xf32, #tpu.memory_space<vmem>>, %arg8: memref<8x32xf32, #tpu.memory_space<vmem>>, %arg9: memref<8x32xf32, #tpu.memory_space<vmem>>, %arg10: memref<8x32xf32, #tpu.memory_space<vmem>>, %arg11: memref<8x64xf32, #tpu.memory_space<vmem>>, %arg12: memref<64x256xf32, #tpu.memory_space<vmem>>) attributes {dimension_semantics = [#tpu.dimension_semantics<parallel>], iteration_bounds = array<i64: 1>, scalar_prefetch = 0 : i64, scratch_operands = 1 : i64, tpu.core_type = #tpu.core_type<tc>, window_params = [{transform_indices = @transform_0, window_bounds = array<i64: 1, 64, 16>}, {transform_indices = @transform_1, window_bounds = array<i64: 8, 1>}, {pipeline_mode = #tpu.pipeline_mode<synchronous>, transform_indices = @transform_2, window_bounds = array<i64: 16, 256>}, {pipeline_mode = #tpu.pipeline_mode<synchronous>, transform_indices = @transform_3, window_bounds = array<i64: 1, 256>}, {pipeline_mode = #tpu.pipeline_mode<synchronous>, transform_indices = @transform_4, window_bounds = array<i64: 32, 128>}, {pipeline_mode = #tpu.pipeline_mode<synchronous>, transform_indices = @transform_5, window_bounds = array<i64: 32, 128>}, {transform_indices = @transform_6, window_bounds = array<i64: 8, 32>}, {transform_indices = @transform_7, window_bounds = array<i64: 8, 32>}, {transform_indices = @transform_8, window_bounds = array<i64: 8, 32>}, {transform_indices = @transform_9, window_bounds = array<i64: 8, 32>}, {transform_indices = @transform_10, window_bounds = array<i64: 8, 64>}]} {
    %c0 = arith.constant 0 : index
    %c0_0 = arith.constant 0 : index
    %c0_1 = arith.constant 0 : index
    %0 = vector.load %arg1[%c0, %c0_0, %c0_1] : memref<1x64x16xf32, #tpu.memory_space<vmem>>, vector<1x64x16xf32>
    %1 = vector.shape_cast %0 : vector<1x64x16xf32> to vector<64x16xf32>
    %c0_2 = arith.constant 0 : index
    %c0_3 = arith.constant 0 : index
    %2 = vector.load %arg3[%c0_2, %c0_3] : memref<16x256xf32, #tpu.memory_space<vmem>>, vector<16x256xf32>
    %cst = arith.constant dense<0.000000e+00> : vector<64x256xf32>
    %3 = tpu.matmul %1, %2, %cst {dimension_numbers = #tpu.dot_dimension_numbers<[1], [0], [0], [1], [0, 0, 1, 1], [], []>} : vector<64x16xf32>, vector<16x256xf32>, vector<64x256xf32> -> vector<64x256xf32>
    %c0_4 = arith.constant 0 : index
    %c0_5 = arith.constant 0 : index
    %4 = vector.load %arg4[%c0_4, %c0_5] : memref<1x256xf32, #tpu.memory_space<vmem>>, vector<1x256xf32>
    %5 = vector.broadcast %4 : vector<1x256xf32> to vector<64x256xf32>
    %6 = arith.addf %3, %5 : vector<64x256xf32>
    %c0_6 = arith.constant 0 : index
    %c0_7 = arith.constant 0 : index
    %7 = vector.load %arg12[%c0_6, %c0_7] : memref<64x256xf32, #tpu.memory_space<vmem>>, vector<64x256xf32>
    tpu.vector_store %arg12[%c0_6, %c0_7], %6 {strides = array<i32>} : memref<64x256xf32, #tpu.memory_space<vmem>>, vector<64x256xf32>,
    %c0_8 = arith.constant 0 : index
    %c0_9 = arith.constant 0 : index
    %8 = vector.load %arg5[%c0_8, %c0_9] : memref<32x128xf32, #tpu.memory_space<vmem>>, vector<32x128xf32>
    %c0_10 = arith.constant 0 : index
    %c0_11 = arith.constant 0 : index
    %9 = vector.load %arg6[%c0_10, %c0_11] : memref<32x128xf32, #tpu.memory_space<vmem>>, vector<32x128xf32>
    %c0_12 = arith.constant 0 : index
    %c0_13 = arith.constant 0 : index
    %10 = vector.load %arg2[%c0_12, %c0_13] : memref<8x1xi32, #tpu.memory_space<vmem>>, vector<8x1xi32>
    %cst_14 = arith.constant -1.000000e+09 : f32
    %11 = vector.broadcast %cst_14 : f32 to vector<8x32xf32>
    %c0_15 = arith.constant 0 : index
    %c0_16 = arith.constant 0 : index
    %12 = vector.load %arg7[%c0_15, %c0_16] : memref<8x32xf32, #tpu.memory_space<vmem>>, vector<8x32xf32>
    %c0_17 = arith.constant 0 : index
    %c0_18 = arith.constant 0 : index
    %13 = vector.load %arg8[%c0_17, %c0_18] : memref<8x32xf32, #tpu.memory_space<vmem>>, vector<8x32xf32>
    %c0_19 = arith.constant 0 : index
    %c0_20 = arith.constant 0 : index
    %14 = vector.load %arg9[%c0_19, %c0_20] : memref<8x32xf32, #tpu.memory_space<vmem>>, vector<8x32xf32>
    %c0_21 = arith.constant 0 : index
    %c0_22 = arith.constant 0 : index
    %15 = vector.load %arg10[%c0_21, %c0_22] : memref<8x32xf32, #tpu.memory_space<vmem>>, vector<8x32xf32>
    %c0_i32 = arith.constant 0 : i32
    %c7_i32 = arith.constant 7 : i32
    %16 = arith.subi %c7_i32, %c0_i32 : i32
    %c8_i32 = arith.constant 8 : i32
    %17 = arith.muli %c0_i32, %c8_i32 : i32
    %18 = tpu.assume_multiple %17, 8 : i32
    %c8_i32_23 = arith.constant 8 : i32
    %19 = arith.muli %16, %c8_i32_23 : i32
    %20 = tpu.assume_multiple %19, 8 : i32
    %21 = arith.index_cast %18 : i32 to index
    %c0_24 = arith.constant 0 : index
    %22 = vector.load %arg12[%21, %c0_24] : memref<64x256xf32, #tpu.memory_space<vmem>>, vector<8x128xf32>
    %cst_25 = arith.constant dense<0.000000e+00> : vector<8x128xf32>
    %23 = tpu.matmul %12, %8, %cst_25 {dimension_numbers = #tpu.dot_dimension_numbers<[1], [0], [0], [1], [0, 0, 1, 1], [], []>} : vector<8x32xf32>, vector<32x128xf32>, vector<8x128xf32> -> vector<8x128xf32>
    %24 = arith.addf %22, %23 : vector<8x128xf32>
    %25 = arith.index_cast %20 : i32 to index
    %c128 = arith.constant 128 : index
    %26 = vector.load %arg12[%25, %c128] : memref<64x256xf32, #tpu.memory_space<vmem>>, vector<8x128xf32>
    %cst_26 = arith.constant dense<0.000000e+00> : vector<8x128xf32>
    %27 = tpu.matmul %14, %9, %cst_26 {dimension_numbers = #tpu.dot_dimension_numbers<[1], [0], [0], [1], [0, 0, 1, 1], [], []>} : vector<8x32xf32>, vector<32x128xf32>, vector<8x128xf32> -> vector<8x128xf32>
    %28 = arith.addf %26, %27 : vector<8x128xf32>
    %29 = vector.extract_strided_slice %24 {offsets = [0, 0], sizes = [8, 32], strides = [1, 1]} : vector<8x128xf32> to vector<8x32xf32>
    %30 = arith.negf %29 : vector<8x32xf32>
    %31 = math.exp %30 : vector<8x32xf32>
    %cst_27 = arith.constant 1.000000e+00 : f32
    %32 = vector.broadcast %cst_27 : f32 to vector<8x32xf32>
    %33 = arith.addf %32, %31 : vector<8x32xf32>
    %34 = arith.divf %32, %33 : vector<8x32xf32>
    %35 = vector.extract_strided_slice %24 {offsets = [0, 32], sizes = [8, 32], strides = [1, 1]} : vector<8x128xf32> to vector<8x32xf32>
    %36 = arith.negf %35 : vector<8x32xf32>
    %37 = math.exp %36 : vector<8x32xf32>
    %cst_28 = arith.constant 1.000000e+00 : f32
    %38 = vector.broadcast %cst_28 : f32 to vector<8x32xf32>
    %39 = arith.addf %38, %37 : vector<8x32xf32>
    %40 = arith.divf %38, %39 : vector<8x32xf32>
    %41 = vector.extract_strided_slice %24 {offsets = [0, 64], sizes = [8, 32], strides = [1, 1]} : vector<8x128xf32> to vector<8x32xf32>
    %42 = math.tanh %41 : vector<8x32xf32>
    %43 = vector.extract_strided_slice %24 {offsets = [0, 96], sizes = [8, 32], strides = [1, 1]} : vector<8x128xf32> to vector<8x32xf32>
    %44 = arith.negf %43 : vector<8x32xf32>
    %45 = math.exp %44 : vector<8x32xf32>
    %cst_29 = arith.constant 1.000000e+00 : f32
    %46 = vector.broadcast %cst_29 : f32 to vector<8x32xf32>
    %47 = arith.addf %46, %45 : vector<8x32xf32>
    %48 = arith.divf %46, %47 : vector<8x32xf32>
    %49 = arith.mulf %40, %13 : vector<8x32xf32>
    %50 = arith.mulf %34, %42 : vector<8x32xf32>
    %51 = arith.addf %49, %50 : vector<8x32xf32>
    %52 = math.tanh %51 : vector<8x32xf32>
    %53 = arith.mulf %48, %52 : vector<8x32xf32>
    %54 = vector.extract_strided_slice %28 {offsets = [0, 0], sizes = [8, 32], strides = [1, 1]} : vector<8x128xf32> to vector<8x32xf32>
    %55 = arith.negf %54 : vector<8x32xf32>
    %56 = math.exp %55 : vector<8x32xf32>
    %cst_30 = arith.constant 1.000000e+00 : f32
    %57 = vector.broadcast %cst_30 : f32 to vector<8x32xf32>
    %58 = arith.addf %57, %56 : vector<8x32xf32>
    %59 = arith.divf %57, %58 : vector<8x32xf32>
    %60 = vector.extract_strided_slice %28 {offsets = [0, 32], sizes = [8, 32], strides = [1, 1]} : vector<8x128xf32> to vector<8x32xf32>
    %61 = arith.negf %60 : vector<8x32xf32>
    %62 = math.exp %61 : vector<8x32xf32>
    %cst_31 = arith.constant 1.000000e+00 : f32
    %63 = vector.broadcast %cst_31 : f32 to vector<8x32xf32>
    %64 = arith.addf %63, %62 : vector<8x32xf32>
    %65 = arith.divf %63, %64 : vector<8x32xf32>
    %66 = vector.extract_strided_slice %28 {offsets = [0, 64], sizes = [8, 32], strides = [1, 1]} : vector<8x128xf32> to vector<8x32xf32>
    %67 = math.tanh %66 : vector<8x32xf32>
    %68 = vector.extract_strided_slice %28 {offsets = [0, 96], sizes = [8, 32], strides = [1, 1]} : vector<8x128xf32> to vector<8x32xf32>
    %69 = arith.negf %68 : vector<8x32xf32>
    %70 = math.exp %69 : vector<8x32xf32>
    %cst_32 = arith.constant 1.000000e+00 : f32
    %71 = vector.broadcast %cst_32 : f32 to vector<8x32xf32>
    %72 = arith.addf %71, %70 : vector<8x32xf32>
    %73 = arith.divf %71, %72 : vector<8x32xf32>
    %74 = arith.mulf %65, %15 : vector<8x32xf32>
    %75 = arith.mulf %59, %67 : vector<8x32xf32>
    %76 = arith.addf %74, %75 : vector<8x32xf32>
    %77 = math.tanh %76 : vector<8x32xf32>
    %78 = arith.mulf %73, %77 : vector<8x32xf32>
    %79 = vector.broadcast %c0_i32 : i32 to vector<8x1xi32>
    %80 = arith.cmpi slt, %79, %10 : vector<8x1xi32>
    %81 = vector.broadcast %16 : i32 to vector<8x1xi32>
    %82 = arith.cmpi slt, %81, %10 : vector<8x1xi32>
    %cst_33 = arith.constant 0.000000e+00 : f32
    %83 = vector.broadcast %cst_33 : f32 to vector<8x32xf32>
    %84 = arith.cmpf one, %53, %83 : vector<8x32xf32>
    %85 = vector.broadcast %80 : vector<8x1xi1> to vector<8x32xi1>
    %86 = arith.andi %85, %84 : vector<8x32xi1>
    %cst_34 = arith.constant -1.000000e+09 : f32
    %87 = vector.broadcast %cst_34 : f32 to vector<8x32xf32>
    %88 = arith.select %86, %53, %87 : vector<8x32xi1>, vector<8x32xf32>
    %cst_35 = arith.constant 0.000000e+00 : f32
    %89 = vector.broadcast %cst_35 : f32 to vector<8x32xf32>
    %90 = arith.cmpf one, %78, %89 : vector<8x32xf32>
    %91 = vector.broadcast %82 : vector<8x1xi1> to vector<8x32xi1>
    %92 = arith.andi %91, %90 : vector<8x32xi1>
    %cst_36 = arith.constant -1.000000e+09 : f32
    %93 = vector.broadcast %cst_36 : f32 to vector<8x32xf32>
    %94 = arith.select %92, %78, %93 : vector<8x32xi1>, vector<8x32xf32>
    %95 = arith.maximumf %11, %88 : vector<8x32xf32>
    %96 = arith.maximumf %11, %94 : vector<8x32xf32>
    %97 = vector.shape_cast %80 : vector<8x1xi1> to vector<8x1xi1>
    %98 = vector.broadcast %97 : vector<8x1xi1> to vector<8x32xi1>
    %99 = arith.select %98, %53, %12 : vector<8x32xi1>, vector<8x32xf32>
    %100 = vector.shape_cast %80 : vector<8x1xi1> to vector<8x1xi1>
    %101 = vector.broadcast %100 : vector<8x1xi1> to vector<8x32xi1>
    %102 = arith.select %101, %51, %13 : vector<8x32xi1>, vector<8x32xf32>
    %103 = vector.shape_cast %82 : vector<8x1xi1> to vector<8x1xi1>
    %104 = vector.broadcast %103 : vector<8x1xi1> to vector<8x32xi1>
    %105 = arith.select %104, %78, %14 : vector<8x32xi1>, vector<8x32xf32>
    %106 = vector.shape_cast %82 : vector<8x1xi1> to vector<8x1xi1>
    %107 = vector.broadcast %106 : vector<8x1xi1> to vector<8x32xi1>
    %108 = arith.select %107, %76, %15 : vector<8x32xi1>, vector<8x32xf32>
    %c1_i32 = arith.constant 1 : i32
    %c7_i32_37 = arith.constant 7 : i32
    %109 = arith.subi %c7_i32_37, %c1_i32 : i32
    %c8_i32_38 = arith.constant 8 : i32
    %110 = arith.muli %c1_i32, %c8_i32_38 : i32
    %111 = tpu.assume_multiple %110, 8 : i32
    %c8_i32_39 = arith.constant 8 : i32
    %112 = arith.muli %109, %c8_i32_39 : i32
    %113 = tpu.assume_multiple %112, 8 : i32
    %114 = arith.index_cast %111 : i32 to index
    %c0_40 = arith.constant 0 : index
    %115 = vector.load %arg12[%114, %c0_40] : memref<64x256xf32, #tpu.memory_space<vmem>>, vector<8x128xf32>
    %cst_41 = arith.constant dense<0.000000e+00> : vector<8x128xf32>
    %116 = tpu.matmul %99, %8, %cst_41 {dimension_numbers = #tpu.dot_dimension_numbers<[1], [0], [0], [1], [0, 0, 1, 1], [], []>} : vector<8x32xf32>, vector<32x128xf32>, vector<8x128xf32> -> vector<8x128xf32>
    %117 = arith.addf %115, %116 : vector<8x128xf32>
    %118 = arith.index_cast %113 : i32 to index
    %c128_42 = arith.constant 128 : index
    %119 = vector.load %arg12[%118, %c128_42] : memref<64x256xf32, #tpu.memory_space<vmem>>, vector<8x128xf32>
    %cst_43 = arith.constant dense<0.000000e+00> : vector<8x128xf32>
    %120 = tpu.matmul %105, %9, %cst_43 {dimension_numbers = #tpu.dot_dimension_numbers<[1], [0], [0], [1], [0, 0, 1, 1], [], []>} : vector<8x32xf32>, vector<32x128xf32>, vector<8x128xf32> -> vector<8x128xf32>
    %121 = arith.addf %119, %120 : vector<8x128xf32>
    %122 = vector.extract_strided_slice %117 {offsets = [0, 0], sizes = [8, 32], strides = [1, 1]} : vector<8x128xf32> to vector<8x32xf32>
    %123 = arith.negf %122 : vector<8x32xf32>
    %124 = math.exp %123 : vector<8x32xf32>
    %cst_44 = arith.constant 1.000000e+00 : f32
    %125 = vector.broadcast %cst_44 : f32 to vector<8x32xf32>
    %126 = arith.addf %125, %124 : vector<8x32xf32>
    %127 = arith.divf %125, %126 : vector<8x32xf32>
    %128 = vector.extract_strided_slice %117 {offsets = [0, 32], sizes = [8, 32], strides = [1, 1]} : vector<8x128xf32> to vector<8x32xf32>
    %129 = arith.negf %128 : vector<8x32xf32>
    %130 = math.exp %129 : vector<8x32xf32>
    %cst_45 = arith.constant 1.000000e+00 : f32
    %131 = vector.broadcast %cst_45 : f32 to vector<8x32xf32>
    %132 = arith.addf %131, %130 : vector<8x32xf32>
    %133 = arith.divf %131, %132 : vector<8x32xf32>
    %134 = vector.extract_strided_slice %117 {offsets = [0, 64], sizes = [8, 32], strides = [1, 1]} : vector<8x128xf32> to vector<8x32xf32>
    %135 = math.tanh %134 : vector<8x32xf32>
    %136 = vector.extract_strided_slice %117 {offsets = [0, 96], sizes = [8, 32], strides = [1, 1]} : vector<8x128xf32> to vector<8x32xf32>
    %137 = arith.negf %136 : vector<8x32xf32>
    %138 = math.exp %137 : vector<8x32xf32>
    %cst_46 = arith.constant 1.000000e+00 : f32
    %139 = vector.broadcast %cst_46 : f32 to vector<8x32xf32>
    %140 = arith.addf %139, %138 : vector<8x32xf32>
    %141 = arith.divf %139, %140 : vector<8x32xf32>
    %142 = arith.mulf %133, %102 : vector<8x32xf32>
    %143 = arith.mulf %127, %135 : vector<8x32xf32>
    %144 = arith.addf %142, %143 : vector<8x32xf32>
    %145 = math.tanh %144 : vector<8x32xf32>
    %146 = arith.mulf %141, %145 : vector<8x32xf32>
    %147 = vector.extract_strided_slice %121 {offsets = [0, 0], sizes = [8, 32], strides = [1, 1]} : vector<8x128xf32> to vector<8x32xf32>
    %148 = arith.negf %147 : vector<8x32xf32>
    %149 = math.exp %148 : vector<8x32xf32>
    %cst_47 = arith.constant 1.000000e+00 : f32
    %150 = vector.broadcast %cst_47 : f32 to vector<8x32xf32>
    %151 = arith.addf %150, %149 : vector<8x32xf32>
    %152 = arith.divf %150, %151 : vector<8x32xf32>
    %153 = vector.extract_strided_slice %121 {offsets = [0, 32], sizes = [8, 32], strides = [1, 1]} : vector<8x128xf32> to vector<8x32xf32>
    %154 = arith.negf %153 : vector<8x32xf32>
    %155 = math.exp %154 : vector<8x32xf32>
    %cst_48 = arith.constant 1.000000e+00 : f32
    %156 = vector.broadcast %cst_48 : f32 to vector<8x32xf32>
    %157 = arith.addf %156, %155 : vector<8x32xf32>
    %158 = arith.divf %156, %157 : vector<8x32xf32>
    %159 = vector.extract_strided_slice %121 {offsets = [0, 64], sizes = [8, 32], strides = [1, 1]} : vector<8x128xf32> to vector<8x32xf32>
    %160 = math.tanh %159 : vector<8x32xf32>
    %161 = vector.extract_strided_slice %121 {offsets = [0, 96], sizes = [8, 32], strides = [1, 1]} : vector<8x128xf32> to vector<8x32xf32>
    %162 = arith.negf %161 : vector<8x32xf32>
    %163 = math.exp %162 : vector<8x32xf32>
    %cst_49 = arith.constant 1.000000e+00 : f32
    %164 = vector.broadcast %cst_49 : f32 to vector<8x32xf32>
    %165 = arith.addf %164, %163 : vector<8x32xf32>
    %166 = arith.divf %164, %165 : vector<8x32xf32>
    %167 = arith.mulf %158, %108 : vector<8x32xf32>
    %168 = arith.mulf %152, %160 : vector<8x32xf32>
    %169 = arith.addf %167, %168 : vector<8x32xf32>
    %170 = math.tanh %169 : vector<8x32xf32>
    %171 = arith.mulf %166, %170 : vector<8x32xf32>
    %172 = vector.broadcast %c1_i32 : i32 to vector<8x1xi32>
    %173 = arith.cmpi slt, %172, %10 : vector<8x1xi32>
    %174 = vector.broadcast %109 : i32 to vector<8x1xi32>
    %175 = arith.cmpi slt, %174, %10 : vector<8x1xi32>
    %cst_50 = arith.constant 0.000000e+00 : f32
    %176 = vector.broadcast %cst_50 : f32 to vector<8x32xf32>
    %177 = arith.cmpf one, %146, %176 : vector<8x32xf32>
    %178 = vector.broadcast %173 : vector<8x1xi1> to vector<8x32xi1>
    %179 = arith.andi %178, %177 : vector<8x32xi1>
    %cst_51 = arith.constant -1.000000e+09 : f32
    %180 = vector.broadcast %cst_51 : f32 to vector<8x32xf32>
    %181 = arith.select %179, %146, %180 : vector<8x32xi1>, vector<8x32xf32>
    %cst_52 = arith.constant 0.000000e+00 : f32
    %182 = vector.broadcast %cst_52 : f32 to vector<8x32xf32>
    %183 = arith.cmpf one, %171, %182 : vector<8x32xf32>
    %184 = vector.broadcast %175 : vector<8x1xi1> to vector<8x32xi1>
    %185 = arith.andi %184, %183 : vector<8x32xi1>
    %cst_53 = arith.constant -1.000000e+09 : f32
    %186 = vector.broadcast %cst_53 : f32 to vector<8x32xf32>
    %187 = arith.select %185, %171, %186 : vector<8x32xi1>, vector<8x32xf32>
    %188 = arith.maximumf %95, %181 : vector<8x32xf32>
    %189 = arith.maximumf %96, %187 : vector<8x32xf32>
    %190 = vector.shape_cast %173 : vector<8x1xi1> to vector<8x1xi1>
    %191 = vector.broadcast %190 : vector<8x1xi1> to vector<8x32xi1>
    %192 = arith.select %191, %146, %99 : vector<8x32xi1>, vector<8x32xf32>
    %193 = vector.shape_cast %173 : vector<8x1xi1> to vector<8x1xi1>
    %194 = vector.broadcast %193 : vector<8x1xi1> to vector<8x32xi1>
    %195 = arith.select %194, %144, %102 : vector<8x32xi1>, vector<8x32xf32>
    %196 = vector.shape_cast %175 : vector<8x1xi1> to vector<8x1xi1>
    %197 = vector.broadcast %196 : vector<8x1xi1> to vector<8x32xi1>
    %198 = arith.select %197, %171, %105 : vector<8x32xi1>, vector<8x32xf32>
    %199 = vector.shape_cast %175 : vector<8x1xi1> to vector<8x1xi1>
    %200 = vector.broadcast %199 : vector<8x1xi1> to vector<8x32xi1>
    %201 = arith.select %200, %169, %108 : vector<8x32xi1>, vector<8x32xf32>
    %c2_i32 = arith.constant 2 : i32
    %c7_i32_54 = arith.constant 7 : i32
    %202 = arith.subi %c7_i32_54, %c2_i32 : i32
    %c8_i32_55 = arith.constant 8 : i32
    %203 = arith.muli %c2_i32, %c8_i32_55 : i32
    %204 = tpu.assume_multiple %203, 8 : i32
    %c8_i32_56 = arith.constant 8 : i32
    %205 = arith.muli %202, %c8_i32_56 : i32
    %206 = tpu.assume_multiple %205, 8 : i32
    %207 = arith.index_cast %204 : i32 to index
    %c0_57 = arith.constant 0 : index
    %208 = vector.load %arg12[%207, %c0_57] : memref<64x256xf32, #tpu.memory_space<vmem>>, vector<8x128xf32>
    %cst_58 = arith.constant dense<0.000000e+00> : vector<8x128xf32>
    %209 = tpu.matmul %192, %8, %cst_58 {dimension_numbers = #tpu.dot_dimension_numbers<[1], [0], [0], [1], [0, 0, 1, 1], [], []>} : vector<8x32xf32>, vector<32x128xf32>, vector<8x128xf32> -> vector<8x128xf32>
    %210 = arith.addf %208, %209 : vector<8x128xf32>
    %211 = arith.index_cast %206 : i32 to index
    %c128_59 = arith.constant 128 : index
    %212 = vector.load %arg12[%211, %c128_59] : memref<64x256xf32, #tpu.memory_space<vmem>>, vector<8x128xf32>
    %cst_60 = arith.constant dense<0.000000e+00> : vector<8x128xf32>
    %213 = tpu.matmul %198, %9, %cst_60 {dimension_numbers = #tpu.dot_dimension_numbers<[1], [0], [0], [1], [0, 0, 1, 1], [], []>} : vector<8x32xf32>, vector<32x128xf32>, vector<8x128xf32> -> vector<8x128xf32>
    %214 = arith.addf %212, %213 : vector<8x128xf32>
    %215 = vector.extract_strided_slice %210 {offsets = [0, 0], sizes = [8, 32], strides = [1, 1]} : vector<8x128xf32> to vector<8x32xf32>
    %216 = arith.negf %215 : vector<8x32xf32>
    %217 = math.exp %216 : vector<8x32xf32>
    %cst_61 = arith.constant 1.000000e+00 : f32
    %218 = vector.broadcast %cst_61 : f32 to vector<8x32xf32>
    %219 = arith.addf %218, %217 : vector<8x32xf32>
    %220 = arith.divf %218, %219 : vector<8x32xf32>
    %221 = vector.extract_strided_slice %210 {offsets = [0, 32], sizes = [8, 32], strides = [1, 1]} : vector<8x128xf32> to vector<8x32xf32>
    %222 = arith.negf %221 : vector<8x32xf32>
    %223 = math.exp %222 : vector<8x32xf32>
    %cst_62 = arith.constant 1.000000e+00 : f32
    %224 = vector.broadcast %cst_62 : f32 to vector<8x32xf32>
    %225 = arith.addf %224, %223 : vector<8x32xf32>
    %226 = arith.divf %224, %225 : vector<8x32xf32>
    %227 = vector.extract_strided_slice %210 {offsets = [0, 64], sizes = [8, 32], strides = [1, 1]} : vector<8x128xf32> to vector<8x32xf32>
    %228 = math.tanh %227 : vector<8x32xf32>
    %229 = vector.extract_strided_slice %210 {offsets = [0, 96], sizes = [8, 32], strides = [1, 1]} : vector<8x128xf32> to vector<8x32xf32>
    %230 = arith.negf %229 : vector<8x32xf32>
    %231 = math.exp %230 : vector<8x32xf32>
    %cst_63 = arith.constant 1.000000e+00 : f32
    %232 = vector.broadcast %cst_63 : f32 to vector<8x32xf32>
    %233 = arith.addf %232, %231 : vector<8x32xf32>
    %234 = arith.divf %232, %233 : vector<8x32xf32>
    %235 = arith.mulf %226, %195 : vector<8x32xf32>
    %236 = arith.mulf %220, %228 : vector<8x32xf32>
    %237 = arith.addf %235, %236 : vector<8x32xf32>
    %238 = math.tanh %237 : vector<8x32xf32>
    %239 = arith.mulf %234, %238 : vector<8x32xf32>
    %240 = vector.extract_strided_slice %214 {offsets = [0, 0], sizes = [8, 32], strides = [1, 1]} : vector<8x128xf32> to vector<8x32xf32>
    %241 = arith.negf %240 : vector<8x32xf32>
    %242 = math.exp %241 : vector<8x32xf32>
    %cst_64 = arith.constant 1.000000e+00 : f32
    %243 = vector.broadcast %cst_64 : f32 to vector<8x32xf32>
    %244 = arith.addf %243, %242 : vector<8x32xf32>
    %245 = arith.divf %243, %244 : vector<8x32xf32>
    %246 = vector.extract_strided_slice %214 {offsets = [0, 32], sizes = [8, 32], strides = [1, 1]} : vector<8x128xf32> to vector<8x32xf32>
    %247 = arith.negf %246 : vector<8x32xf32>
    %248 = math.exp %247 : vector<8x32xf32>
    %cst_65 = arith.constant 1.000000e+00 : f32
    %249 = vector.broadcast %cst_65 : f32 to vector<8x32xf32>
    %250 = arith.addf %249, %248 : vector<8x32xf32>
    %251 = arith.divf %249, %250 : vector<8x32xf32>
    %252 = vector.extract_strided_slice %214 {offsets = [0, 64], sizes = [8, 32], strides = [1, 1]} : vector<8x128xf32> to vector<8x32xf32>
    %253 = math.tanh %252 : vector<8x32xf32>
    %254 = vector.extract_strided_slice %214 {offsets = [0, 96], sizes = [8, 32], strides = [1, 1]} : vector<8x128xf32> to vector<8x32xf32>
    %255 = arith.negf %254 : vector<8x32xf32>
    %256 = math.exp %255 : vector<8x32xf32>
    %cst_66 = arith.constant 1.000000e+00 : f32
    %257 = vector.broadcast %cst_66 : f32 to vector<8x32xf32>
    %258 = arith.addf %257, %256 : vector<8x32xf32>
    %259 = arith.divf %257, %258 : vector<8x32xf32>
    %260 = arith.mulf %251, %201 : vector<8x32xf32>
    %261 = arith.mulf %245, %253 : vector<8x32xf32>
    %262 = arith.addf %260, %261 : vector<8x32xf32>
    %263 = math.tanh %262 : vector<8x32xf32>
    %264 = arith.mulf %259, %263 : vector<8x32xf32>
    %265 = vector.broadcast %c2_i32 : i32 to vector<8x1xi32>
    %266 = arith.cmpi slt, %265, %10 : vector<8x1xi32>
    %267 = vector.broadcast %202 : i32 to vector<8x1xi32>
    %268 = arith.cmpi slt, %267, %10 : vector<8x1xi32>
    %cst_67 = arith.constant 0.000000e+00 : f32
    %269 = vector.broadcast %cst_67 : f32 to vector<8x32xf32>
    %270 = arith.cmpf one, %239, %269 : vector<8x32xf32>
    %271 = vector.broadcast %266 : vector<8x1xi1> to vector<8x32xi1>
    %272 = arith.andi %271, %270 : vector<8x32xi1>
    %cst_68 = arith.constant -1.000000e+09 : f32
    %273 = vector.broadcast %cst_68 : f32 to vector<8x32xf32>
    %274 = arith.select %272, %239, %273 : vector<8x32xi1>, vector<8x32xf32>
    %cst_69 = arith.constant 0.000000e+00 : f32
    %275 = vector.broadcast %cst_69 : f32 to vector<8x32xf32>
    %276 = arith.cmpf one, %264, %275 : vector<8x32xf32>
    %277 = vector.broadcast %268 : vector<8x1xi1> to vector<8x32xi1>
    %278 = arith.andi %277, %276 : vector<8x32xi1>
    %cst_70 = arith.constant -1.000000e+09 : f32
    %279 = vector.broadcast %cst_70 : f32 to vector<8x32xf32>
    %280 = arith.select %278, %264, %279 : vector<8x32xi1>, vector<8x32xf32>
    %281 = arith.maximumf %188, %274 : vector<8x32xf32>
    %282 = arith.maximumf %189, %280 : vector<8x32xf32>
    %283 = vector.shape_cast %266 : vector<8x1xi1> to vector<8x1xi1>
    %284 = vector.broadcast %283 : vector<8x1xi1> to vector<8x32xi1>
    %285 = arith.select %284, %239, %192 : vector<8x32xi1>, vector<8x32xf32>
    %286 = vector.shape_cast %266 : vector<8x1xi1> to vector<8x1xi1>
    %287 = vector.broadcast %286 : vector<8x1xi1> to vector<8x32xi1>
    %288 = arith.select %287, %237, %195 : vector<8x32xi1>, vector<8x32xf32>
    %289 = vector.shape_cast %268 : vector<8x1xi1> to vector<8x1xi1>
    %290 = vector.broadcast %289 : vector<8x1xi1> to vector<8x32xi1>
    %291 = arith.select %290, %264, %198 : vector<8x32xi1>, vector<8x32xf32>
    %292 = vector.shape_cast %268 : vector<8x1xi1> to vector<8x1xi1>
    %293 = vector.broadcast %292 : vector<8x1xi1> to vector<8x32xi1>
    %294 = arith.select %293, %262, %201 : vector<8x32xi1>, vector<8x32xf32>
    %c3_i32 = arith.constant 3 : i32
    %c7_i32_71 = arith.constant 7 : i32
    %295 = arith.subi %c7_i32_71, %c3_i32 : i32
    %c8_i32_72 = arith.constant 8 : i32
    %296 = arith.muli %c3_i32, %c8_i32_72 : i32
    %297 = tpu.assume_multiple %296, 8 : i32
    %c8_i32_73 = arith.constant 8 : i32
    %298 = arith.muli %295, %c8_i32_73 : i32
    %299 = tpu.assume_multiple %298, 8 : i32
    %300 = arith.index_cast %297 : i32 to index
    %c0_74 = arith.constant 0 : index
    %301 = vector.load %arg12[%300, %c0_74] : memref<64x256xf32, #tpu.memory_space<vmem>>, vector<8x128xf32>
    %cst_75 = arith.constant dense<0.000000e+00> : vector<8x128xf32>
    %302 = tpu.matmul %285, %8, %cst_75 {dimension_numbers = #tpu.dot_dimension_numbers<[1], [0], [0], [1], [0, 0, 1, 1], [], []>} : vector<8x32xf32>, vector<32x128xf32>, vector<8x128xf32> -> vector<8x128xf32>
    %303 = arith.addf %301, %302 : vector<8x128xf32>
    %304 = arith.index_cast %299 : i32 to index
    %c128_76 = arith.constant 128 : index
    %305 = vector.load %arg12[%304, %c128_76] : memref<64x256xf32, #tpu.memory_space<vmem>>, vector<8x128xf32>
    %cst_77 = arith.constant dense<0.000000e+00> : vector<8x128xf32>
    %306 = tpu.matmul %291, %9, %cst_77 {dimension_numbers = #tpu.dot_dimension_numbers<[1], [0], [0], [1], [0, 0, 1, 1], [], []>} : vector<8x32xf32>, vector<32x128xf32>, vector<8x128xf32> -> vector<8x128xf32>
    %307 = arith.addf %305, %306 : vector<8x128xf32>
    %308 = vector.extract_strided_slice %303 {offsets = [0, 0], sizes = [8, 32], strides = [1, 1]} : vector<8x128xf32> to vector<8x32xf32>
    %309 = arith.negf %308 : vector<8x32xf32>
    %310 = math.exp %309 : vector<8x32xf32>
    %cst_78 = arith.constant 1.000000e+00 : f32
    %311 = vector.broadcast %cst_78 : f32 to vector<8x32xf32>
    %312 = arith.addf %311, %310 : vector<8x32xf32>
    %313 = arith.divf %311, %312 : vector<8x32xf32>
    %314 = vector.extract_strided_slice %303 {offsets = [0, 32], sizes = [8, 32], strides = [1, 1]} : vector<8x128xf32> to vector<8x32xf32>
    %315 = arith.negf %314 : vector<8x32xf32>
    %316 = math.exp %315 : vector<8x32xf32>
    %cst_79 = arith.constant 1.000000e+00 : f32
    %317 = vector.broadcast %cst_79 : f32 to vector<8x32xf32>
    %318 = arith.addf %317, %316 : vector<8x32xf32>
    %319 = arith.divf %317, %318 : vector<8x32xf32>
    %320 = vector.extract_strided_slice %303 {offsets = [0, 64], sizes = [8, 32], strides = [1, 1]} : vector<8x128xf32> to vector<8x32xf32>
    %321 = math.tanh %320 : vector<8x32xf32>
    %322 = vector.extract_strided_slice %303 {offsets = [0, 96], sizes = [8, 32], strides = [1, 1]} : vector<8x128xf32> to vector<8x32xf32>
    %323 = arith.negf %322 : vector<8x32xf32>
    %324 = math.exp %323 : vector<8x32xf32>
    %cst_80 = arith.constant 1.000000e+00 : f32
    %325 = vector.broadcast %cst_80 : f32 to vector<8x32xf32>
    %326 = arith.addf %325, %324 : vector<8x32xf32>
    %327 = arith.divf %325, %326 : vector<8x32xf32>
    %328 = arith.mulf %319, %288 : vector<8x32xf32>
    %329 = arith.mulf %313, %321 : vector<8x32xf32>
    %330 = arith.addf %328, %329 : vector<8x32xf32>
    %331 = math.tanh %330 : vector<8x32xf32>
    %332 = arith.mulf %327, %331 : vector<8x32xf32>
    %333 = vector.extract_strided_slice %307 {offsets = [0, 0], sizes = [8, 32], strides = [1, 1]} : vector<8x128xf32> to vector<8x32xf32>
    %334 = arith.negf %333 : vector<8x32xf32>
    %335 = math.exp %334 : vector<8x32xf32>
    %cst_81 = arith.constant 1.000000e+00 : f32
    %336 = vector.broadcast %cst_81 : f32 to vector<8x32xf32>
    %337 = arith.addf %336, %335 : vector<8x32xf32>
    %338 = arith.divf %336, %337 : vector<8x32xf32>
    %339 = vector.extract_strided_slice %307 {offsets = [0, 32], sizes = [8, 32], strides = [1, 1]} : vector<8x128xf32> to vector<8x32xf32>
    %340 = arith.negf %339 : vector<8x32xf32>
    %341 = math.exp %340 : vector<8x32xf32>
    %cst_82 = arith.constant 1.000000e+00 : f32
    %342 = vector.broadcast %cst_82 : f32 to vector<8x32xf32>
    %343 = arith.addf %342, %341 : vector<8x32xf32>
    %344 = arith.divf %342, %343 : vector<8x32xf32>
    %345 = vector.extract_strided_slice %307 {offsets = [0, 64], sizes = [8, 32], strides = [1, 1]} : vector<8x128xf32> to vector<8x32xf32>
    %346 = math.tanh %345 : vector<8x32xf32>
    %347 = vector.extract_strided_slice %307 {offsets = [0, 96], sizes = [8, 32], strides = [1, 1]} : vector<8x128xf32> to vector<8x32xf32>
    %348 = arith.negf %347 : vector<8x32xf32>
    %349 = math.exp %348 : vector<8x32xf32>
    %cst_83 = arith.constant 1.000000e+00 : f32
    %350 = vector.broadcast %cst_83 : f32 to vector<8x32xf32>
    %351 = arith.addf %350, %349 : vector<8x32xf32>
    %352 = arith.divf %350, %351 : vector<8x32xf32>
    %353 = arith.mulf %344, %294 : vector<8x32xf32>
    %354 = arith.mulf %338, %346 : vector<8x32xf32>
    %355 = arith.addf %353, %354 : vector<8x32xf32>
    %356 = math.tanh %355 : vector<8x32xf32>
    %357 = arith.mulf %352, %356 : vector<8x32xf32>
    %358 = vector.broadcast %c3_i32 : i32 to vector<8x1xi32>
    %359 = arith.cmpi slt, %358, %10 : vector<8x1xi32>
    %360 = vector.broadcast %295 : i32 to vector<8x1xi32>
    %361 = arith.cmpi slt, %360, %10 : vector<8x1xi32>
    %cst_84 = arith.constant 0.000000e+00 : f32
    %362 = vector.broadcast %cst_84 : f32 to vector<8x32xf32>
    %363 = arith.cmpf one, %332, %362 : vector<8x32xf32>
    %364 = vector.broadcast %359 : vector<8x1xi1> to vector<8x32xi1>
    %365 = arith.andi %364, %363 : vector<8x32xi1>
    %cst_85 = arith.constant -1.000000e+09 : f32
    %366 = vector.broadcast %cst_85 : f32 to vector<8x32xf32>
    %367 = arith.select %365, %332, %366 : vector<8x32xi1>, vector<8x32xf32>
    %cst_86 = arith.constant 0.000000e+00 : f32
    %368 = vector.broadcast %cst_86 : f32 to vector<8x32xf32>
    %369 = arith.cmpf one, %357, %368 : vector<8x32xf32>
    %370 = vector.broadcast %361 : vector<8x1xi1> to vector<8x32xi1>
    %371 = arith.andi %370, %369 : vector<8x32xi1>
    %cst_87 = arith.constant -1.000000e+09 : f32
    %372 = vector.broadcast %cst_87 : f32 to vector<8x32xf32>
    %373 = arith.select %371, %357, %372 : vector<8x32xi1>, vector<8x32xf32>
    %374 = arith.maximumf %281, %367 : vector<8x32xf32>
    %375 = arith.maximumf %282, %373 : vector<8x32xf32>
    %376 = vector.shape_cast %359 : vector<8x1xi1> to vector<8x1xi1>
    %377 = vector.broadcast %376 : vector<8x1xi1> to vector<8x32xi1>
    %378 = arith.select %377, %332, %285 : vector<8x32xi1>, vector<8x32xf32>
    %379 = vector.shape_cast %359 : vector<8x1xi1> to vector<8x1xi1>
    %380 = vector.broadcast %379 : vector<8x1xi1> to vector<8x32xi1>
    %381 = arith.select %380, %330, %288 : vector<8x32xi1>, vector<8x32xf32>
    %382 = vector.shape_cast %361 : vector<8x1xi1> to vector<8x1xi1>
    %383 = vector.broadcast %382 : vector<8x1xi1> to vector<8x32xi1>
    %384 = arith.select %383, %357, %291 : vector<8x32xi1>, vector<8x32xf32>
    %385 = vector.shape_cast %361 : vector<8x1xi1> to vector<8x1xi1>
    %386 = vector.broadcast %385 : vector<8x1xi1> to vector<8x32xi1>
    %387 = arith.select %386, %355, %294 : vector<8x32xi1>, vector<8x32xf32>
    %c4_i32 = arith.constant 4 : i32
    %c7_i32_88 = arith.constant 7 : i32
    %388 = arith.subi %c7_i32_88, %c4_i32 : i32
    %c8_i32_89 = arith.constant 8 : i32
    %389 = arith.muli %c4_i32, %c8_i32_89 : i32
    %390 = tpu.assume_multiple %389, 8 : i32
    %c8_i32_90 = arith.constant 8 : i32
    %391 = arith.muli %388, %c8_i32_90 : i32
    %392 = tpu.assume_multiple %391, 8 : i32
    %393 = arith.index_cast %390 : i32 to index
    %c0_91 = arith.constant 0 : index
    %394 = vector.load %arg12[%393, %c0_91] : memref<64x256xf32, #tpu.memory_space<vmem>>, vector<8x128xf32>
    %cst_92 = arith.constant dense<0.000000e+00> : vector<8x128xf32>
    %395 = tpu.matmul %378, %8, %cst_92 {dimension_numbers = #tpu.dot_dimension_numbers<[1], [0], [0], [1], [0, 0, 1, 1], [], []>} : vector<8x32xf32>, vector<32x128xf32>, vector<8x128xf32> -> vector<8x128xf32>
    %396 = arith.addf %394, %395 : vector<8x128xf32>
    %397 = arith.index_cast %392 : i32 to index
    %c128_93 = arith.constant 128 : index
    %398 = vector.load %arg12[%397, %c128_93] : memref<64x256xf32, #tpu.memory_space<vmem>>, vector<8x128xf32>
    %cst_94 = arith.constant dense<0.000000e+00> : vector<8x128xf32>
    %399 = tpu.matmul %384, %9, %cst_94 {dimension_numbers = #tpu.dot_dimension_numbers<[1], [0], [0], [1], [0, 0, 1, 1], [], []>} : vector<8x32xf32>, vector<32x128xf32>, vector<8x128xf32> -> vector<8x128xf32>
    %400 = arith.addf %398, %399 : vector<8x128xf32>
    %401 = vector.extract_strided_slice %396 {offsets = [0, 0], sizes = [8, 32], strides = [1, 1]} : vector<8x128xf32> to vector<8x32xf32>
    %402 = arith.negf %401 : vector<8x32xf32>
    %403 = math.exp %402 : vector<8x32xf32>
    %cst_95 = arith.constant 1.000000e+00 : f32
    %404 = vector.broadcast %cst_95 : f32 to vector<8x32xf32>
    %405 = arith.addf %404, %403 : vector<8x32xf32>
    %406 = arith.divf %404, %405 : vector<8x32xf32>
    %407 = vector.extract_strided_slice %396 {offsets = [0, 32], sizes = [8, 32], strides = [1, 1]} : vector<8x128xf32> to vector<8x32xf32>
    %408 = arith.negf %407 : vector<8x32xf32>
    %409 = math.exp %408 : vector<8x32xf32>
    %cst_96 = arith.constant 1.000000e+00 : f32
    %410 = vector.broadcast %cst_96 : f32 to vector<8x32xf32>
    %411 = arith.addf %410, %409 : vector<8x32xf32>
    %412 = arith.divf %410, %411 : vector<8x32xf32>
    %413 = vector.extract_strided_slice %396 {offsets = [0, 64], sizes = [8, 32], strides = [1, 1]} : vector<8x128xf32> to vector<8x32xf32>
    %414 = math.tanh %413 : vector<8x32xf32>
    %415 = vector.extract_strided_slice %396 {offsets = [0, 96], sizes = [8, 32], strides = [1, 1]} : vector<8x128xf32> to vector<8x32xf32>
    %416 = arith.negf %415 : vector<8x32xf32>
    %417 = math.exp %416 : vector<8x32xf32>
    %cst_97 = arith.constant 1.000000e+00 : f32
    %418 = vector.broadcast %cst_97 : f32 to vector<8x32xf32>
    %419 = arith.addf %418, %417 : vector<8x32xf32>
    %420 = arith.divf %418, %419 : vector<8x32xf32>
    %421 = arith.mulf %412, %381 : vector<8x32xf32>
    %422 = arith.mulf %406, %414 : vector<8x32xf32>
    %423 = arith.addf %421, %422 : vector<8x32xf32>
    %424 = math.tanh %423 : vector<8x32xf32>
    %425 = arith.mulf %420, %424 : vector<8x32xf32>
    %426 = vector.extract_strided_slice %400 {offsets = [0, 0], sizes = [8, 32], strides = [1, 1]} : vector<8x128xf32> to vector<8x32xf32>
    %427 = arith.negf %426 : vector<8x32xf32>
    %428 = math.exp %427 : vector<8x32xf32>
    %cst_98 = arith.constant 1.000000e+00 : f32
    %429 = vector.broadcast %cst_98 : f32 to vector<8x32xf32>
    %430 = arith.addf %429, %428 : vector<8x32xf32>
    %431 = arith.divf %429, %430 : vector<8x32xf32>
    %432 = vector.extract_strided_slice %400 {offsets = [0, 32], sizes = [8, 32], strides = [1, 1]} : vector<8x128xf32> to vector<8x32xf32>
    %433 = arith.negf %432 : vector<8x32xf32>
    %434 = math.exp %433 : vector<8x32xf32>
    %cst_99 = arith.constant 1.000000e+00 : f32
    %435 = vector.broadcast %cst_99 : f32 to vector<8x32xf32>
    %436 = arith.addf %435, %434 : vector<8x32xf32>
    %437 = arith.divf %435, %436 : vector<8x32xf32>
    %438 = vector.extract_strided_slice %400 {offsets = [0, 64], sizes = [8, 32], strides = [1, 1]} : vector<8x128xf32> to vector<8x32xf32>
    %439 = math.tanh %438 : vector<8x32xf32>
    %440 = vector.extract_strided_slice %400 {offsets = [0, 96], sizes = [8, 32], strides = [1, 1]} : vector<8x128xf32> to vector<8x32xf32>
    %441 = arith.negf %440 : vector<8x32xf32>
    %442 = math.exp %441 : vector<8x32xf32>
    %cst_100 = arith.constant 1.000000e+00 : f32
    %443 = vector.broadcast %cst_100 : f32 to vector<8x32xf32>
    %444 = arith.addf %443, %442 : vector<8x32xf32>
    %445 = arith.divf %443, %444 : vector<8x32xf32>
    %446 = arith.mulf %437, %387 : vector<8x32xf32>
    %447 = arith.mulf %431, %439 : vector<8x32xf32>
    %448 = arith.addf %446, %447 : vector<8x32xf32>
    %449 = math.tanh %448 : vector<8x32xf32>
    %450 = arith.mulf %445, %449 : vector<8x32xf32>
    %451 = vector.broadcast %c4_i32 : i32 to vector<8x1xi32>
    %452 = arith.cmpi slt, %451, %10 : vector<8x1xi32>
    %453 = vector.broadcast %388 : i32 to vector<8x1xi32>
    %454 = arith.cmpi slt, %453, %10 : vector<8x1xi32>
    %cst_101 = arith.constant 0.000000e+00 : f32
    %455 = vector.broadcast %cst_101 : f32 to vector<8x32xf32>
    %456 = arith.cmpf one, %425, %455 : vector<8x32xf32>
    %457 = vector.broadcast %452 : vector<8x1xi1> to vector<8x32xi1>
    %458 = arith.andi %457, %456 : vector<8x32xi1>
    %cst_102 = arith.constant -1.000000e+09 : f32
    %459 = vector.broadcast %cst_102 : f32 to vector<8x32xf32>
    %460 = arith.select %458, %425, %459 : vector<8x32xi1>, vector<8x32xf32>
    %cst_103 = arith.constant 0.000000e+00 : f32
    %461 = vector.broadcast %cst_103 : f32 to vector<8x32xf32>
    %462 = arith.cmpf one, %450, %461 : vector<8x32xf32>
    %463 = vector.broadcast %454 : vector<8x1xi1> to vector<8x32xi1>
    %464 = arith.andi %463, %462 : vector<8x32xi1>
    %cst_104 = arith.constant -1.000000e+09 : f32
    %465 = vector.broadcast %cst_104 : f32 to vector<8x32xf32>
    %466 = arith.select %464, %450, %465 : vector<8x32xi1>, vector<8x32xf32>
    %467 = arith.maximumf %374, %460 : vector<8x32xf32>
    %468 = arith.maximumf %375, %466 : vector<8x32xf32>
    %469 = vector.shape_cast %452 : vector<8x1xi1> to vector<8x1xi1>
    %470 = vector.broadcast %469 : vector<8x1xi1> to vector<8x32xi1>
    %471 = arith.select %470, %425, %378 : vector<8x32xi1>, vector<8x32xf32>
    %472 = vector.shape_cast %452 : vector<8x1xi1> to vector<8x1xi1>
    %473 = vector.broadcast %472 : vector<8x1xi1> to vector<8x32xi1>
    %474 = arith.select %473, %423, %381 : vector<8x32xi1>, vector<8x32xf32>
    %475 = vector.shape_cast %454 : vector<8x1xi1> to vector<8x1xi1>
    %476 = vector.broadcast %475 : vector<8x1xi1> to vector<8x32xi1>
    %477 = arith.select %476, %450, %384 : vector<8x32xi1>, vector<8x32xf32>
    %478 = vector.shape_cast %454 : vector<8x1xi1> to vector<8x1xi1>
    %479 = vector.broadcast %478 : vector<8x1xi1> to vector<8x32xi1>
    %480 = arith.select %479, %448, %387 : vector<8x32xi1>, vector<8x32xf32>
    %c5_i32 = arith.constant 5 : i32
    %c7_i32_105 = arith.constant 7 : i32
    %481 = arith.subi %c7_i32_105, %c5_i32 : i32
    %c8_i32_106 = arith.constant 8 : i32
    %482 = arith.muli %c5_i32, %c8_i32_106 : i32
    %483 = tpu.assume_multiple %482, 8 : i32
    %c8_i32_107 = arith.constant 8 : i32
    %484 = arith.muli %481, %c8_i32_107 : i32
    %485 = tpu.assume_multiple %484, 8 : i32
    %486 = arith.index_cast %483 : i32 to index
    %c0_108 = arith.constant 0 : index
    %487 = vector.load %arg12[%486, %c0_108] : memref<64x256xf32, #tpu.memory_space<vmem>>, vector<8x128xf32>
    %cst_109 = arith.constant dense<0.000000e+00> : vector<8x128xf32>
    %488 = tpu.matmul %471, %8, %cst_109 {dimension_numbers = #tpu.dot_dimension_numbers<[1], [0], [0], [1], [0, 0, 1, 1], [], []>} : vector<8x32xf32>, vector<32x128xf32>, vector<8x128xf32> -> vector<8x128xf32>
    %489 = arith.addf %487, %488 : vector<8x128xf32>
    %490 = arith.index_cast %485 : i32 to index
    %c128_110 = arith.constant 128 : index
    %491 = vector.load %arg12[%490, %c128_110] : memref<64x256xf32, #tpu.memory_space<vmem>>, vector<8x128xf32>
    %cst_111 = arith.constant dense<0.000000e+00> : vector<8x128xf32>
    %492 = tpu.matmul %477, %9, %cst_111 {dimension_numbers = #tpu.dot_dimension_numbers<[1], [0], [0], [1], [0, 0, 1, 1], [], []>} : vector<8x32xf32>, vector<32x128xf32>, vector<8x128xf32> -> vector<8x128xf32>
    %493 = arith.addf %491, %492 : vector<8x128xf32>
    %494 = vector.extract_strided_slice %489 {offsets = [0, 0], sizes = [8, 32], strides = [1, 1]} : vector<8x128xf32> to vector<8x32xf32>
    %495 = arith.negf %494 : vector<8x32xf32>
    %496 = math.exp %495 : vector<8x32xf32>
    %cst_112 = arith.constant 1.000000e+00 : f32
    %497 = vector.broadcast %cst_112 : f32 to vector<8x32xf32>
    %498 = arith.addf %497, %496 : vector<8x32xf32>
    %499 = arith.divf %497, %498 : vector<8x32xf32>
    %500 = vector.extract_strided_slice %489 {offsets = [0, 32], sizes = [8, 32], strides = [1, 1]} : vector<8x128xf32> to vector<8x32xf32>
    %501 = arith.negf %500 : vector<8x32xf32>
    %502 = math.exp %501 : vector<8x32xf32>
    %cst_113 = arith.constant 1.000000e+00 : f32
    %503 = vector.broadcast %cst_113 : f32 to vector<8x32xf32>
    %504 = arith.addf %503, %502 : vector<8x32xf32>
    %505 = arith.divf %503, %504 : vector<8x32xf32>
    %506 = vector.extract_strided_slice %489 {offsets = [0, 64], sizes = [8, 32], strides = [1, 1]} : vector<8x128xf32> to vector<8x32xf32>
    %507 = math.tanh %506 : vector<8x32xf32>
    %508 = vector.extract_strided_slice %489 {offsets = [0, 96], sizes = [8, 32], strides = [1, 1]} : vector<8x128xf32> to vector<8x32xf32>
    %509 = arith.negf %508 : vector<8x32xf32>
    %510 = math.exp %509 : vector<8x32xf32>
    %cst_114 = arith.constant 1.000000e+00 : f32
    %511 = vector.broadcast %cst_114 : f32 to vector<8x32xf32>
    %512 = arith.addf %511, %510 : vector<8x32xf32>
    %513 = arith.divf %511, %512 : vector<8x32xf32>
    %514 = arith.mulf %505, %474 : vector<8x32xf32>
    %515 = arith.mulf %499, %507 : vector<8x32xf32>
    %516 = arith.addf %514, %515 : vector<8x32xf32>
    %517 = math.tanh %516 : vector<8x32xf32>
    %518 = arith.mulf %513, %517 : vector<8x32xf32>
    %519 = vector.extract_strided_slice %493 {offsets = [0, 0], sizes = [8, 32], strides = [1, 1]} : vector<8x128xf32> to vector<8x32xf32>
    %520 = arith.negf %519 : vector<8x32xf32>
    %521 = math.exp %520 : vector<8x32xf32>
    %cst_115 = arith.constant 1.000000e+00 : f32
    %522 = vector.broadcast %cst_115 : f32 to vector<8x32xf32>
    %523 = arith.addf %522, %521 : vector<8x32xf32>
    %524 = arith.divf %522, %523 : vector<8x32xf32>
    %525 = vector.extract_strided_slice %493 {offsets = [0, 32], sizes = [8, 32], strides = [1, 1]} : vector<8x128xf32> to vector<8x32xf32>
    %526 = arith.negf %525 : vector<8x32xf32>
    %527 = math.exp %526 : vector<8x32xf32>
    %cst_116 = arith.constant 1.000000e+00 : f32
    %528 = vector.broadcast %cst_116 : f32 to vector<8x32xf32>
    %529 = arith.addf %528, %527 : vector<8x32xf32>
    %530 = arith.divf %528, %529 : vector<8x32xf32>
    %531 = vector.extract_strided_slice %493 {offsets = [0, 64], sizes = [8, 32], strides = [1, 1]} : vector<8x128xf32> to vector<8x32xf32>
    %532 = math.tanh %531 : vector<8x32xf32>
    %533 = vector.extract_strided_slice %493 {offsets = [0, 96], sizes = [8, 32], strides = [1, 1]} : vector<8x128xf32> to vector<8x32xf32>
    %534 = arith.negf %533 : vector<8x32xf32>
    %535 = math.exp %534 : vector<8x32xf32>
    %cst_117 = arith.constant 1.000000e+00 : f32
    %536 = vector.broadcast %cst_117 : f32 to vector<8x32xf32>
    %537 = arith.addf %536, %535 : vector<8x32xf32>
    %538 = arith.divf %536, %537 : vector<8x32xf32>
    %539 = arith.mulf %530, %480 : vector<8x32xf32>
    %540 = arith.mulf %524, %532 : vector<8x32xf32>
    %541 = arith.addf %539, %540 : vector<8x32xf32>
    %542 = math.tanh %541 : vector<8x32xf32>
    %543 = arith.mulf %538, %542 : vector<8x32xf32>
    %544 = vector.broadcast %c5_i32 : i32 to vector<8x1xi32>
    %545 = arith.cmpi slt, %544, %10 : vector<8x1xi32>
    %546 = vector.broadcast %481 : i32 to vector<8x1xi32>
    %547 = arith.cmpi slt, %546, %10 : vector<8x1xi32>
    %cst_118 = arith.constant 0.000000e+00 : f32
    %548 = vector.broadcast %cst_118 : f32 to vector<8x32xf32>
    %549 = arith.cmpf one, %518, %548 : vector<8x32xf32>
    %550 = vector.broadcast %545 : vector<8x1xi1> to vector<8x32xi1>
    %551 = arith.andi %550, %549 : vector<8x32xi1>
    %cst_119 = arith.constant -1.000000e+09 : f32
    %552 = vector.broadcast %cst_119 : f32 to vector<8x32xf32>
    %553 = arith.select %551, %518, %552 : vector<8x32xi1>, vector<8x32xf32>
    %cst_120 = arith.constant 0.000000e+00 : f32
    %554 = vector.broadcast %cst_120 : f32 to vector<8x32xf32>
    %555 = arith.cmpf one, %543, %554 : vector<8x32xf32>
    %556 = vector.broadcast %547 : vector<8x1xi1> to vector<8x32xi1>
    %557 = arith.andi %556, %555 : vector<8x32xi1>
    %cst_121 = arith.constant -1.000000e+09 : f32
    %558 = vector.broadcast %cst_121 : f32 to vector<8x32xf32>
    %559 = arith.select %557, %543, %558 : vector<8x32xi1>, vector<8x32xf32>
    %560 = arith.maximumf %467, %553 : vector<8x32xf32>
    %561 = arith.maximumf %468, %559 : vector<8x32xf32>
    %562 = vector.shape_cast %545 : vector<8x1xi1> to vector<8x1xi1>
    %563 = vector.broadcast %562 : vector<8x1xi1> to vector<8x32xi1>
    %564 = arith.select %563, %518, %471 : vector<8x32xi1>, vector<8x32xf32>
    %565 = vector.shape_cast %545 : vector<8x1xi1> to vector<8x1xi1>
    %566 = vector.broadcast %565 : vector<8x1xi1> to vector<8x32xi1>
    %567 = arith.select %566, %516, %474 : vector<8x32xi1>, vector<8x32xf32>
    %568 = vector.shape_cast %547 : vector<8x1xi1> to vector<8x1xi1>
    %569 = vector.broadcast %568 : vector<8x1xi1> to vector<8x32xi1>
    %570 = arith.select %569, %543, %477 : vector<8x32xi1>, vector<8x32xf32>
    %571 = vector.shape_cast %547 : vector<8x1xi1> to vector<8x1xi1>
    %572 = vector.broadcast %571 : vector<8x1xi1> to vector<8x32xi1>
    %573 = arith.select %572, %541, %480 : vector<8x32xi1>, vector<8x32xf32>
    %c6_i32 = arith.constant 6 : i32
    %c7_i32_122 = arith.constant 7 : i32
    %574 = arith.subi %c7_i32_122, %c6_i32 : i32
    %c8_i32_123 = arith.constant 8 : i32
    %575 = arith.muli %c6_i32, %c8_i32_123 : i32
    %576 = tpu.assume_multiple %575, 8 : i32
    %c8_i32_124 = arith.constant 8 : i32
    %577 = arith.muli %574, %c8_i32_124 : i32
    %578 = tpu.assume_multiple %577, 8 : i32
    %579 = arith.index_cast %576 : i32 to index
    %c0_125 = arith.constant 0 : index
    %580 = vector.load %arg12[%579, %c0_125] : memref<64x256xf32, #tpu.memory_space<vmem>>, vector<8x128xf32>
    %cst_126 = arith.constant dense<0.000000e+00> : vector<8x128xf32>
    %581 = tpu.matmul %564, %8, %cst_126 {dimension_numbers = #tpu.dot_dimension_numbers<[1], [0], [0], [1], [0, 0, 1, 1], [], []>} : vector<8x32xf32>, vector<32x128xf32>, vector<8x128xf32> -> vector<8x128xf32>
    %582 = arith.addf %580, %581 : vector<8x128xf32>
    %583 = arith.index_cast %578 : i32 to index
    %c128_127 = arith.constant 128 : index
    %584 = vector.load %arg12[%583, %c128_127] : memref<64x256xf32, #tpu.memory_space<vmem>>, vector<8x128xf32>
    %cst_128 = arith.constant dense<0.000000e+00> : vector<8x128xf32>
    %585 = tpu.matmul %570, %9, %cst_128 {dimension_numbers = #tpu.dot_dimension_numbers<[1], [0], [0], [1], [0, 0, 1, 1], [], []>} : vector<8x32xf32>, vector<32x128xf32>, vector<8x128xf32> -> vector<8x128xf32>
    %586 = arith.addf %584, %585 : vector<8x128xf32>
    %587 = vector.extract_strided_slice %582 {offsets = [0, 0], sizes = [8, 32], strides = [1, 1]} : vector<8x128xf32> to vector<8x32xf32>
    %588 = arith.negf %587 : vector<8x32xf32>
    %589 = math.exp %588 : vector<8x32xf32>
    %cst_129 = arith.constant 1.000000e+00 : f32
    %590 = vector.broadcast %cst_129 : f32 to vector<8x32xf32>
    %591 = arith.addf %590, %589 : vector<8x32xf32>
    %592 = arith.divf %590, %591 : vector<8x32xf32>
    %593 = vector.extract_strided_slice %582 {offsets = [0, 32], sizes = [8, 32], strides = [1, 1]} : vector<8x128xf32> to vector<8x32xf32>
    %594 = arith.negf %593 : vector<8x32xf32>
    %595 = math.exp %594 : vector<8x32xf32>
    %cst_130 = arith.constant 1.000000e+00 : f32
    %596 = vector.broadcast %cst_130 : f32 to vector<8x32xf32>
    %597 = arith.addf %596, %595 : vector<8x32xf32>
    %598 = arith.divf %596, %597 : vector<8x32xf32>
    %599 = vector.extract_strided_slice %582 {offsets = [0, 64], sizes = [8, 32], strides = [1, 1]} : vector<8x128xf32> to vector<8x32xf32>
    %600 = math.tanh %599 : vector<8x32xf32>
    %601 = vector.extract_strided_slice %582 {offsets = [0, 96], sizes = [8, 32], strides = [1, 1]} : vector<8x128xf32> to vector<8x32xf32>
    %602 = arith.negf %601 : vector<8x32xf32>
    %603 = math.exp %602 : vector<8x32xf32>
    %cst_131 = arith.constant 1.000000e+00 : f32
    %604 = vector.broadcast %cst_131 : f32 to vector<8x32xf32>
    %605 = arith.addf %604, %603 : vector<8x32xf32>
    %606 = arith.divf %604, %605 : vector<8x32xf32>
    %607 = arith.mulf %598, %567 : vector<8x32xf32>
    %608 = arith.mulf %592, %600 : vector<8x32xf32>
    %609 = arith.addf %607, %608 : vector<8x32xf32>
    %610 = math.tanh %609 : vector<8x32xf32>
    %611 = arith.mulf %606, %610 : vector<8x32xf32>
    %612 = vector.extract_strided_slice %586 {offsets = [0, 0], sizes = [8, 32], strides = [1, 1]} : vector<8x128xf32> to vector<8x32xf32>
    %613 = arith.negf %612 : vector<8x32xf32>
    %614 = math.exp %613 : vector<8x32xf32>
    %cst_132 = arith.constant 1.000000e+00 : f32
    %615 = vector.broadcast %cst_132 : f32 to vector<8x32xf32>
    %616 = arith.addf %615, %614 : vector<8x32xf32>
    %617 = arith.divf %615, %616 : vector<8x32xf32>
    %618 = vector.extract_strided_slice %586 {offsets = [0, 32], sizes = [8, 32], strides = [1, 1]} : vector<8x128xf32> to vector<8x32xf32>
    %619 = arith.negf %618 : vector<8x32xf32>
    %620 = math.exp %619 : vector<8x32xf32>
    %cst_133 = arith.constant 1.000000e+00 : f32
    %621 = vector.broadcast %cst_133 : f32 to vector<8x32xf32>
    %622 = arith.addf %621, %620 : vector<8x32xf32>
    %623 = arith.divf %621, %622 : vector<8x32xf32>
    %624 = vector.extract_strided_slice %586 {offsets = [0, 64], sizes = [8, 32], strides = [1, 1]} : vector<8x128xf32> to vector<8x32xf32>
    %625 = math.tanh %624 : vector<8x32xf32>
    %626 = vector.extract_strided_slice %586 {offsets = [0, 96], sizes = [8, 32], strides = [1, 1]} : vector<8x128xf32> to vector<8x32xf32>
    %627 = arith.negf %626 : vector<8x32xf32>
    %628 = math.exp %627 : vector<8x32xf32>
    %cst_134 = arith.constant 1.000000e+00 : f32
    %629 = vector.broadcast %cst_134 : f32 to vector<8x32xf32>
    %630 = arith.addf %629, %628 : vector<8x32xf32>
    %631 = arith.divf %629, %630 : vector<8x32xf32>
    %632 = arith.mulf %623, %573 : vector<8x32xf32>
    %633 = arith.mulf %617, %625 : vector<8x32xf32>
    %634 = arith.addf %632, %633 : vector<8x32xf32>
    %635 = math.tanh %634 : vector<8x32xf32>
    %636 = arith.mulf %631, %635 : vector<8x32xf32>
    %637 = vector.broadcast %c6_i32 : i32 to vector<8x1xi32>
    %638 = arith.cmpi slt, %637, %10 : vector<8x1xi32>
    %639 = vector.broadcast %574 : i32 to vector<8x1xi32>
    %640 = arith.cmpi slt, %639, %10 : vector<8x1xi32>
    %cst_135 = arith.constant 0.000000e+00 : f32
    %641 = vector.broadcast %cst_135 : f32 to vector<8x32xf32>
    %642 = arith.cmpf one, %611, %641 : vector<8x32xf32>
    %643 = vector.broadcast %638 : vector<8x1xi1> to vector<8x32xi1>
    %644 = arith.andi %643, %642 : vector<8x32xi1>
    %cst_136 = arith.constant -1.000000e+09 : f32
    %645 = vector.broadcast %cst_136 : f32 to vector<8x32xf32>
    %646 = arith.select %644, %611, %645 : vector<8x32xi1>, vector<8x32xf32>
    %cst_137 = arith.constant 0.000000e+00 : f32
    %647 = vector.broadcast %cst_137 : f32 to vector<8x32xf32>
    %648 = arith.cmpf one, %636, %647 : vector<8x32xf32>
    %649 = vector.broadcast %640 : vector<8x1xi1> to vector<8x32xi1>
    %650 = arith.andi %649, %648 : vector<8x32xi1>
    %cst_138 = arith.constant -1.000000e+09 : f32
    %651 = vector.broadcast %cst_138 : f32 to vector<8x32xf32>
    %652 = arith.select %650, %636, %651 : vector<8x32xi1>, vector<8x32xf32>
    %653 = arith.maximumf %560, %646 : vector<8x32xf32>
    %654 = arith.maximumf %561, %652 : vector<8x32xf32>
    %655 = vector.shape_cast %638 : vector<8x1xi1> to vector<8x1xi1>
    %656 = vector.broadcast %655 : vector<8x1xi1> to vector<8x32xi1>
    %657 = arith.select %656, %611, %564 : vector<8x32xi1>, vector<8x32xf32>
    %658 = vector.shape_cast %638 : vector<8x1xi1> to vector<8x1xi1>
    %659 = vector.broadcast %658 : vector<8x1xi1> to vector<8x32xi1>
    %660 = arith.select %659, %609, %567 : vector<8x32xi1>, vector<8x32xf32>
    %661 = vector.shape_cast %640 : vector<8x1xi1> to vector<8x1xi1>
    %662 = vector.broadcast %661 : vector<8x1xi1> to vector<8x32xi1>
    %663 = arith.select %662, %636, %570 : vector<8x32xi1>, vector<8x32xf32>
    %664 = vector.shape_cast %640 : vector<8x1xi1> to vector<8x1xi1>
    %665 = vector.broadcast %664 : vector<8x1xi1> to vector<8x32xi1>
    %666 = arith.select %665, %634, %573 : vector<8x32xi1>, vector<8x32xf32>
    %c7_i32_139 = arith.constant 7 : i32
    %c7_i32_140 = arith.constant 7 : i32
    %667 = arith.subi %c7_i32_140, %c7_i32_139 : i32
    %c8_i32_141 = arith.constant 8 : i32
    %668 = arith.muli %c7_i32_139, %c8_i32_141 : i32
    %669 = tpu.assume_multiple %668, 8 : i32
    %c8_i32_142 = arith.constant 8 : i32
    %670 = arith.muli %667, %c8_i32_142 : i32
    %671 = tpu.assume_multiple %670, 8 : i32
    %672 = arith.index_cast %669 : i32 to index
    %c0_143 = arith.constant 0 : index
    %673 = vector.load %arg12[%672, %c0_143] : memref<64x256xf32, #tpu.memory_space<vmem>>, vector<8x128xf32>
    %cst_144 = arith.constant dense<0.000000e+00> : vector<8x128xf32>
    %674 = tpu.matmul %657, %8, %cst_144 {dimension_numbers = #tpu.dot_dimension_numbers<[1], [0], [0], [1], [0, 0, 1, 1], [], []>} : vector<8x32xf32>, vector<32x128xf32>, vector<8x128xf32> -> vector<8x128xf32>
    %675 = arith.addf %673, %674 : vector<8x128xf32>
    %676 = arith.index_cast %671 : i32 to index
    %c128_145 = arith.constant 128 : index
    %677 = vector.load %arg12[%676, %c128_145] : memref<64x256xf32, #tpu.memory_space<vmem>>, vector<8x128xf32>
    %cst_146 = arith.constant dense<0.000000e+00> : vector<8x128xf32>
    %678 = tpu.matmul %663, %9, %cst_146 {dimension_numbers = #tpu.dot_dimension_numbers<[1], [0], [0], [1], [0, 0, 1, 1], [], []>} : vector<8x32xf32>, vector<32x128xf32>, vector<8x128xf32> -> vector<8x128xf32>
    %679 = arith.addf %677, %678 : vector<8x128xf32>
    %680 = vector.extract_strided_slice %675 {offsets = [0, 0], sizes = [8, 32], strides = [1, 1]} : vector<8x128xf32> to vector<8x32xf32>
    %681 = arith.negf %680 : vector<8x32xf32>
    %682 = math.exp %681 : vector<8x32xf32>
    %cst_147 = arith.constant 1.000000e+00 : f32
    %683 = vector.broadcast %cst_147 : f32 to vector<8x32xf32>
    %684 = arith.addf %683, %682 : vector<8x32xf32>
    %685 = arith.divf %683, %684 : vector<8x32xf32>
    %686 = vector.extract_strided_slice %675 {offsets = [0, 32], sizes = [8, 32], strides = [1, 1]} : vector<8x128xf32> to vector<8x32xf32>
    %687 = arith.negf %686 : vector<8x32xf32>
    %688 = math.exp %687 : vector<8x32xf32>
    %cst_148 = arith.constant 1.000000e+00 : f32
    %689 = vector.broadcast %cst_148 : f32 to vector<8x32xf32>
    %690 = arith.addf %689, %688 : vector<8x32xf32>
    %691 = arith.divf %689, %690 : vector<8x32xf32>
    %692 = vector.extract_strided_slice %675 {offsets = [0, 64], sizes = [8, 32], strides = [1, 1]} : vector<8x128xf32> to vector<8x32xf32>
    %693 = math.tanh %692 : vector<8x32xf32>
    %694 = vector.extract_strided_slice %675 {offsets = [0, 96], sizes = [8, 32], strides = [1, 1]} : vector<8x128xf32> to vector<8x32xf32>
    %695 = arith.negf %694 : vector<8x32xf32>
    %696 = math.exp %695 : vector<8x32xf32>
    %cst_149 = arith.constant 1.000000e+00 : f32
    %697 = vector.broadcast %cst_149 : f32 to vector<8x32xf32>
    %698 = arith.addf %697, %696 : vector<8x32xf32>
    %699 = arith.divf %697, %698 : vector<8x32xf32>
    %700 = arith.mulf %691, %660 : vector<8x32xf32>
    %701 = arith.mulf %685, %693 : vector<8x32xf32>
    %702 = arith.addf %700, %701 : vector<8x32xf32>
    %703 = math.tanh %702 : vector<8x32xf32>
    %704 = arith.mulf %699, %703 : vector<8x32xf32>
    %705 = vector.extract_strided_slice %679 {offsets = [0, 0], sizes = [8, 32], strides = [1, 1]} : vector<8x128xf32> to vector<8x32xf32>
    %706 = arith.negf %705 : vector<8x32xf32>
    %707 = math.exp %706 : vector<8x32xf32>
    %cst_150 = arith.constant 1.000000e+00 : f32
    %708 = vector.broadcast %cst_150 : f32 to vector<8x32xf32>
    %709 = arith.addf %708, %707 : vector<8x32xf32>
    %710 = arith.divf %708, %709 : vector<8x32xf32>
    %711 = vector.extract_strided_slice %679 {offsets = [0, 32], sizes = [8, 32], strides = [1, 1]} : vector<8x128xf32> to vector<8x32xf32>
    %712 = arith.negf %711 : vector<8x32xf32>
    %713 = math.exp %712 : vector<8x32xf32>
    %cst_151 = arith.constant 1.000000e+00 : f32
    %714 = vector.broadcast %cst_151 : f32 to vector<8x32xf32>
    %715 = arith.addf %714, %713 : vector<8x32xf32>
    %716 = arith.divf %714, %715 : vector<8x32xf32>
    %717 = vector.extract_strided_slice %679 {offsets = [0, 64], sizes = [8, 32], strides = [1, 1]} : vector<8x128xf32> to vector<8x32xf32>
    %718 = math.tanh %717 : vector<8x32xf32>
    %719 = vector.extract_strided_slice %679 {offsets = [0, 96], sizes = [8, 32], strides = [1, 1]} : vector<8x128xf32> to vector<8x32xf32>
    %720 = arith.negf %719 : vector<8x32xf32>
    %721 = math.exp %720 : vector<8x32xf32>
    %cst_152 = arith.constant 1.000000e+00 : f32
    %722 = vector.broadcast %cst_152 : f32 to vector<8x32xf32>
    %723 = arith.addf %722, %721 : vector<8x32xf32>
    %724 = arith.divf %722, %723 : vector<8x32xf32>
    %725 = arith.mulf %716, %666 : vector<8x32xf32>
    %726 = arith.mulf %710, %718 : vector<8x32xf32>
    %727 = arith.addf %725, %726 : vector<8x32xf32>
    %728 = math.tanh %727 : vector<8x32xf32>
    %729 = arith.mulf %724, %728 : vector<8x32xf32>
    %730 = vector.broadcast %c7_i32_139 : i32 to vector<8x1xi32>
    %731 = arith.cmpi slt, %730, %10 : vector<8x1xi32>
    %732 = vector.broadcast %667 : i32 to vector<8x1xi32>
    %733 = arith.cmpi slt, %732, %10 : vector<8x1xi32>
    %cst_153 = arith.constant 0.000000e+00 : f32
    %734 = vector.broadcast %cst_153 : f32 to vector<8x32xf32>
    %735 = arith.cmpf one, %704, %734 : vector<8x32xf32>
    %736 = vector.broadcast %731 : vector<8x1xi1> to vector<8x32xi1>
    %737 = arith.andi %736, %735 : vector<8x32xi1>
    %cst_154 = arith.constant -1.000000e+09 : f32
    %738 = vector.broadcast %cst_154 : f32 to vector<8x32xf32>
    %739 = arith.select %737, %704, %738 : vector<8x32xi1>, vector<8x32xf32>
    %cst_155 = arith.constant 0.000000e+00 : f32
    %740 = vector.broadcast %cst_155 : f32 to vector<8x32xf32>
    %741 = arith.cmpf one, %729, %740 : vector<8x32xf32>
    %742 = vector.broadcast %733 : vector<8x1xi1> to vector<8x32xi1>
    %743 = arith.andi %742, %741 : vector<8x32xi1>
    %cst_156 = arith.constant -1.000000e+09 : f32
    %744 = vector.broadcast %cst_156 : f32 to vector<8x32xf32>
    %745 = arith.select %743, %729, %744 : vector<8x32xi1>, vector<8x32xf32>
    %746 = arith.maximumf %653, %739 : vector<8x32xf32>
    %747 = arith.maximumf %654, %745 : vector<8x32xf32>
    %748 = vector.shape_cast %731 : vector<8x1xi1> to vector<8x1xi1>
    %749 = vector.broadcast %748 : vector<8x1xi1> to vector<8x32xi1>
    %750 = arith.select %749, %704, %657 : vector<8x32xi1>, vector<8x32xf32>
    %751 = vector.shape_cast %731 : vector<8x1xi1> to vector<8x1xi1>
    %752 = vector.broadcast %751 : vector<8x1xi1> to vector<8x32xi1>
    %753 = arith.select %752, %702, %660 : vector<8x32xi1>, vector<8x32xf32>
    %754 = vector.shape_cast %733 : vector<8x1xi1> to vector<8x1xi1>
    %755 = vector.broadcast %754 : vector<8x1xi1> to vector<8x32xi1>
    %756 = arith.select %755, %729, %663 : vector<8x32xi1>, vector<8x32xf32>
    %757 = vector.shape_cast %733 : vector<8x1xi1> to vector<8x1xi1>
    %758 = vector.broadcast %757 : vector<8x1xi1> to vector<8x32xi1>
    %759 = arith.select %758, %727, %666 : vector<8x32xi1>, vector<8x32xf32>
    %c8_i32_157 = arith.constant 8 : i32
    %c0_158 = arith.constant 0 : index
    %c0_159 = arith.constant 0 : index
    %760 = vector.load %arg11[%c0_158, %c0_159] : memref<8x64xf32, #tpu.memory_space<vmem>>, vector<8x32xf32>
    tpu.vector_store %arg11[%c0_158, %c0_159], %746 {strides = array<i32>} : memref<8x64xf32, #tpu.memory_space<vmem>>, vector<8x32xf32>,
    %c0_160 = arith.constant 0 : index
    %c32 = arith.constant 32 : index
    %761 = vector.load %arg11[%c0_160, %c32] : memref<8x64xf32, #tpu.memory_space<vmem>>, vector<8x32xf32>
    tpu.vector_store %arg11[%c0_160, %c32], %747 {strides = array<i32>} : memref<8x64xf32, #tpu.memory_space<vmem>>, vector<8x32xf32>,
    return
  }
  func.func @transform_0(%arg0: i32) -> (i32, i32, i32) {
    %c0_i32 = arith.constant 0 : i32
    %c0_i32_0 = arith.constant 0 : i32
    %c0_i32_1 = arith.constant 0 : i32
    return %arg0, %c0_i32, %c0_i32_0 : i32, i32, i32
  }
  func.func @transform_1(%arg0: i32) -> (i32, i32) {
    %c0_i32 = arith.constant 0 : i32
    %c0_i32_0 = arith.constant 0 : i32
    return %arg0, %c0_i32 : i32, i32
  }
  func.func @transform_2(%arg0: i32) -> (i32, i32) {
    %c0_i32 = arith.constant 0 : i32
    %c0_i32_0 = arith.constant 0 : i32
    %c0_i32_1 = arith.constant 0 : i32
    return %c0_i32, %c0_i32_0 : i32, i32
  }
  func.func @transform_3(%arg0: i32) -> (i32, i32) {
    %c0_i32 = arith.constant 0 : i32
    %c0_i32_0 = arith.constant 0 : i32
    %c0_i32_1 = arith.constant 0 : i32
    return %c0_i32, %c0_i32_0 : i32, i32
  }
  func.func @transform_4(%arg0: i32) -> (i32, i32) {
    %c0_i32 = arith.constant 0 : i32
    %c0_i32_0 = arith.constant 0 : i32
    %c0_i32_1 = arith.constant 0 : i32
    return %c0_i32, %c0_i32_0 : i32, i32
  }
  func.func @transform_5(%arg0: i32) -> (i32, i32) {
    %c0_i32 = arith.constant 0 : i32
    %c0_i32_0 = arith.constant 0 : i32
    %c0_i32_1 = arith.constant 0 : i32
    return %c0_i32, %c0_i32_0 : i32, i32
  }
  func.func @transform_6(%arg0: i32) -> (i32, i32) {
    %c0_i32 = arith.constant 0 : i32
    %c0_i32_0 = arith.constant 0 : i32
    return %arg0, %c0_i32 : i32, i32
  }
  func.func @transform_7(%arg0: i32) -> (i32, i32) {
    %c0_i32 = arith.constant 0 : i32
    %c0_i32_0 = arith.constant 0 : i32
    return %arg0, %c0_i32 : i32, i32
  }
  func.func @transform_8(%arg0: i32) -> (i32, i32) {
    %c0_i32 = arith.constant 0 : i32
    %c0_i32_0 = arith.constant 0 : i32
    return %arg0, %c0_i32 : i32, i32
  }
  func.func @transform_9(%arg0: i32) -> (i32, i32) {
    %c0_i32 = arith.constant 0 : i32
    %c0_i32_0 = arith.constant 0 : i32
    return %arg0, %c0_i32 : i32, i32
  }
  func.func @transform_10(%arg0: i32) -> (i32, i32) {
    %c0_i32 = arith.constant 0 : i32
    %c0_i32_0 = arith.constant 0 : i32
    return %arg0, %c0_i32 : i32, i32
  }
}

</mosaic_0001>

<bundles_post_ra>
// kernel: tpu_custom_call.1
= control target key start
LH: loop header
LB: loop body
LE: loop exit
PB: predicated region body
PF: predicated region fallthrough
CT: control target
= control target key end

     0   :  { %15 = vsyncpa [#allocation4], 0  ;;  %s2443_s0 = inlined_call_operand.vmem [shape: f32[1,64,16], index: 0, kind: input, shape index: {}]   ;;  %s2444_s1 = inlined_call_operand.vmem [shape: s32[8,1], index: 1, kind: input, shape index: {}]   ;;  %s2445_s2 = inlined_call_operand.vmem [shape: f32[16,256], index: 2, kind: input, shape index: {}]   ;;  %s2446_s3 = inlined_call_operand.hbm [shape: f32[1,256], index: 3, kind: input, shape index: {}]   ;;  %s2447_s4 = inlined_call_operand.vmem [shape: f32[32,128], index: 4, kind: input, shape index: {}]   ;;  %s2448_s5 = inlined_call_operand.hbm [shape: f32[32,128], index: 5, kind: input, shape index: {}]   ;;  %s2449_s6 = inlined_call_operand.vmem [shape: f32[8,32], index: 6, kind: input, shape index: {}]   ;;  %s2450_s7 = inlined_call_operand.vmem [shape: f32[8,32], index: 7, kind: input, shape index: {}]   ;;  %s2451_s8 = inlined_call_operand.vmem [shape: f32[8,32], index: 8, kind: input, shape index: {}]   ;;  %s2452_s9 = inlined_call_operand.vmem [shape: f32[8,32], index: 9, kind: input, shape index: {}]   ;;  %s2453_s10 = inlined_call_operand.hbm [shape: f32[8,64], index: 10, kind: output, shape index: {}]  }
   0x1   :  { %16 = vsyncpa [#allocation7], 0 }
   0x2   :  { %17 = vsyncpa [#allocation5], 0  ;;  %s29_s15 = sshll.u32 %s2446_s3, 4  ;;  %s1729_s16 = smov [#allocation3]   ;;  %s30_s15 = int_to_ptr.hbm [resolvable:$true] %s29_s15 }
   0x3   :  { %s31_s17 = sshll.u32 %s1729_s16, 4  ;;  %s41_s20 = sshll.u32 %s2448_s5, 4  ;;  %s32_s17 = int_to_ptr.vmem [resolvable:$true] %s31_s17  ;;  %s42_s20 = int_to_ptr.hbm [resolvable:$true] %s41_s20 }
   0x4   :  { %34 = dma.hbm_to_vmem [thread:$0]  %s30_s15, 32, %s32_s17, [#allocation4]  }
   0x5   :  { %s1730_s21 = smov [#allocation6]   ;;  %s1731_s23 = smov 128  }
   0x6   :  { %s43_s22 = sshll.u32 %s1730_s21, 4  ;;  %s1732_s24 = smov 8   ;;  %s44_s22 = int_to_ptr.vmem [resolvable:$true] %s43_s22 }
   0x7   :  { %49 = dma.hbm_to_vmem [thread:$0]  %s42_s20, 512, %s44_s22, [#allocation7], %s1731_s23, %s1731_s23, %s1732_s24  }
   0x8   :  { %1723 = dma.done.wait [#allocation4], 32  }
   0x9   :  { %1724 = vsyncadd [#allocation4], 4294967264 }
   0xa   :  { %1725 = dma.done.wait [#allocation7], 512  }
   0xb   :  { %1726 = vsyncadd [#allocation7], 4294966784  ;;  %v77_v0 = vld [vmem:[%s2445_s2 + $0x18] sm:$0xff]  ;;  %v75_v2 = vld [vmem:[%s2445_s2 + $0x8] sm:$0xff]  ;;  %vm84_vm0 = vcmask 130048   ;;  %vm224_vm1 = vcmask 261120  }
   0xc   :  { %v1805_v1 = vld [vmem:[%s2447_s4 + $0x18] sm:$0xff]  ;;  %164 = vmatpush.msra.mxu1 %v77_v0  ;;  %v1814_v3 = vld [vmem:[%s2447_s4 + $0x10] sm:$0xff]  ;;  %v66_v4 = vld [vmem:[%s2443_s0] sm:$0xff]  ;;  %s1733_s28 = smov 32   ;;  %s1736_s19 = smov 96  }
   0xd   :  { %240 = vmatpush.msra.mxu2 %v1805_v1  ;;  %v1822_v5 = vld [vmem:[%s2447_s4 + $0x8] sm:$0xff]  ;;  %v76_v6 = vld [vmem:[%s2445_s2 + $0x10] sm:$0xff]  ;;  %v74_v7 = vld [vmem:[%s2445_s2] sm:$0xff]  ;;  %s1437_s27 = sshll.u32 %s2453_s10, 4  ;;  %s1438_s27 = int_to_ptr.hbm [resolvable:$true] %s1437_s27 }
   0xe   :  { %165 = vmatpush.msra.mxu1 %v75_v2  ;;  %v1835_v8 = vld [vmem:[%s2447_s4] sm:$0xff]  ;;  %123 = vmatpush.msra.mxu0 %v76_v6  ;;  %v67_v10 = vld [vmem:[%s2443_s0 + $0x8] sm:$0xff]  ;;  %v1855_v12 = vld [vmem:[#allocation6 + $0x10] sm:$0xff] }
   0xf   :  { %241 = vmatpush.msra.mxu2 %v1814_v3  ;;  %1463 = vmatmul.msk.f32.vlgmr.msra.gmra.mxu1 %vm84_vm0, %v66_v4  ;;  %v1841_v9 = vld [vmem:[%s2449_s6] sm:$0xff]  ;;  %v68_v13 = vld [vmem:[%s2443_s0 + $0x10] sm:$0xff]  ;;  %v69_v17 = vld [vmem:[%s2443_s0 + $0x18] sm:$0xff] }
  0x10   :  { %124 = vmatpush.msra.mxu0 %v74_v7  ;;  %v1853_v11 = vld [vmem:[#allocation6 + $0x18] sm:$0xff]  ;;  %v1868_v14 = vld [vmem:[#allocation6 + $0x8] sm:$0xff]  ;;  %v1870_v15 = vld [vmem:[#allocation6] sm:$0xff] }
  0x11   :  { %242 = vmatpush.msra.mxu2 %v1822_v5  ;;  %1455 = vmatmul.msk.f32.vlgmr.msra.gmra.mxu0 %vm84_vm0, %v66_v4  ;;  %v1877_v16 = vld [vmem:[%s2451_s8] sm:$0xff]  ;;  %v71_v21 = vld [vmem:[%s2443_s0 + $0x28] sm:$0xff]  ;;  %v72_v22 = vld [vmem:[%s2443_s0 + $0x30] sm:$0xff] }
  0x12   :  { %268 = vmatpush.msra.mxu3 %v1853_v11  ;;  %v217_v18 = vld [vmem:[%s2450_s7] sm:$0xff]  ;;  %v73_v23 = vld [vmem:[%s2443_s0 + $0x38] sm:$0xff] }
  0x13   :  { %243 = vmatpush.msra.mxu2 %v1835_v8  ;;  %298 = vrot.lane.b32.xlu1 %v217_v18, %s1733_s28  ;;  %v70_v19 = vld [vmem:[%s2443_s0 + $0x20] sm:$0xff]  ;;  %s1734_s0 = smov 64  }
  0x14   :  { %1471 = vmatmul.msk.f32.vlgmr.msra.gmra.mxu2 %vm224_vm1, %v1841_v9  ;;  %269 = vmatpush.msra.mxu3 %v1855_v12  ;;  %v219_v20 = vld [vmem:[%s2452_s9] sm:$0xff] }
  0x15   :  { %410 = vmatpush.msrb.mxu2 %v1805_v1  ;;  %v78_v24 = vld [vmem:[#allocation3] sm:$0x3] }
  0x16   :  { %270 = vmatpush.msra.mxu3 %v1868_v14  ;;  %v81_v25 = vperm.slane %v78_v24, 1  ;;  %v1927_v28 = vperm.slane %v78_v24, 0 }
  0x17   :  { %411 = vmatpush.msrb.mxu2 %v1814_v3  ;;  %1464 = vmatmul.msk.f32.gmra.mxu1 %vm84_vm0, %v67_v10 }
  0x18   :  { %271 = vmatpush.msra.mxu3 %v1870_v15 }
  0x19   :  { %412 = vmatpush.msrb.mxu2 %v1822_v5  ;;  %1456 = vmatmul.msk.f32.gmra.mxu0 %vm84_vm0, %v67_v10  ;;  %v1735_v10 = vmov 0  }
  0x1a   :  { %1472 = vmatmul.msk.f32.vlgmr.msra.gmra.mxu3 %vm224_vm1, %v1877_v16  ;;  %1512 = vset.pattern.permute.xlu2 %v1735_v10 }
  0x1b   :  { %413 = vmatpush.msrb.mxu2 %v1835_v8  ;;  %440 = vmatpush.msrb.mxu3 %v1853_v11 }
  0x1c   :  { %339 = vrot.lane.b32.xlu1 %v219_v20, %s1733_s28  ;;  %1513 = vset.pattern.permute.xlu0 %v1735_v10 }
  0x1d   :  { %568 = vmatpush.msra.mxu2 %v1805_v1  ;;  %441 = vmatpush.msrb.mxu3 %v1855_v12 }
  0x1e   :  { %1514 = vset.pattern.permute.xlu1 %v1735_v10 }
  0x1f   :  { %569 = vmatpush.msra.mxu2 %v1814_v3  ;;  %1465 = vmatmul.msk.f32.gmra.mxu1 %vm84_vm0, %v68_v13 }
  0x20   :  { %442 = vmatpush.msrb.mxu3 %v1868_v14 }
  0x21   :  { %570 = vmatpush.msra.mxu2 %v1822_v5  ;;  %1457 = vmatmul.msk.f32.gmra.mxu0 %vm84_vm0, %v68_v13 }
  0x22   :  { %443 = vmatpush.msrb.mxu3 %v1870_v15 }
  0x23   :  { %571 = vmatpush.msra.mxu2 %v1835_v8 }
  0x24   :  { %598 = vmatpush.msra.mxu3 %v1853_v11 }
  0x26   :  { %599 = vmatpush.msra.mxu3 %v1855_v12 }
  0x27   :  { %1466 = vmatmul.msk.f32.gmra.mxu1 %vm84_vm0, %v69_v17 }
  0x28   :  { %600 = vmatpush.msra.mxu3 %v1868_v14 }
  0x29   :  { %1458 = vmatmul.msk.f32.gmra.mxu0 %vm84_vm0, %v69_v17 }
  0x2a   :  { %601 = vmatpush.msra.mxu3 %v1870_v15 }
  0x2f   :  { %1467 = vmatmul.msk.f32.gmra.mxu1 %vm84_vm0, %v70_v19 }
  0x31   :  { %1459 = vmatmul.msk.f32.gmra.mxu0 %vm84_vm0, %v70_v19 }
  0x37   :  { %1468 = vmatmul.msk.f32.gmra.mxu1 %vm84_vm0, %v71_v21 }
  0x39   :  { %1460 = vmatmul.msk.f32.gmra.mxu0 %vm84_vm0, %v71_v21 }
  0x3f   :  { %1469 = vmatmul.msk.f32.gmra.mxu1 %vm84_vm0, %v72_v22 }
  0x41   :  { %1461 = vmatmul.msk.f32.gmra.mxu0 %vm84_vm0, %v72_v22 }
  0x47   :  { %1470 = vmatmul.msk.f32.gmra.mxu1 %vm84_vm0, %v73_v23 }
  0x49   :  { %1462 = vmatmul.msk.f32.gmra.mxu0 %vm84_vm0, %v73_v23 }
  0x8c   :  { %v167_v26 = vpop.f32.mrf.mxu1 }
  0x8d   :  { %v1925_v27 = vadd.f32 %v167_v26, %v81_v25 }
  0x8e   :  { %v126_v29 = vpop.f32.mrf.mxu0 }
  0x8f   :  { %v127_v30 = vadd.f32 %v126_v29, %v1927_v28 }
  0x94   :  { %v170_v31 = vpop.f32.mrf.mxu1 }
  0x95   :  { %v1930_v32 = vadd.f32 %v170_v31, %v81_v25 }
  0x97   :  { %v245_v33 = vpop.f32.mrf.mxu2 }
  0x98   :  { %v248_v34 = vadd.f32 %v245_v33, %v127_v30  ;;  %v1954_v30 = vld [vmem:[%s2444_s1] sm:$0xff]  ;;  %v1960_v33 = vpop.permute.xlu1 %298 }
  0x99   :  { %vm359_vm10 = vcmp.gt.s32.totalorder %v1954_v30, 0  ;;  %vm360_vm11 = vcmp.gt.s32.totalorder %v1954_v30, 7 }
  0x9a   :  { %1515 = vtanh.f32 %v248_v34  ;;  %v1473_v51 = vmul.f32 -1.442695, %v248_v34  ;;  %v362_v31 = vsel %vm359_vm10, 1, %v1735_v10 }
  0x9c   :  { %v173_v35 = vpop.f32.mrf.mxu1 }
  0x9d   :  { %v1932_v36 = vadd.f32 %v173_v35, %v81_v25  ;;  %v273_v47 = vpop.f32.mrf.mxu3 }
  0xa0   :  { %v1516_v37 = vpop.eup %1515 }
  0xa1   :  { %303 = vrot.lane.b32.xlu0 %v1516_v37, %s1734_s0 }
  0xa4   :  { %v176_v38 = vpop.f32.mrf.mxu1 }
  0xa5   :  { %v1935_v39 = vadd.f32 %v176_v38, %v81_v25 }
  0xac   :  { %v179_v40 = vpop.f32.mrf.mxu1 }
  0xad   :  { %v1937_v41 = vadd.f32 %v179_v40, %v81_v25  ;;  %v370_v40 = vsel %vm360_vm11, 1, %v1735_v10 }
  0xb4   :  { %v182_v42 = vpop.f32.mrf.mxu1 }
  0xb5   :  { %v1939_v43 = vadd.f32 %v182_v42, %v81_v25  ;;  %v1970_v42 = vpop.permute.xlu1 %339 }
  0xbc   :  { %v185_v44 = vpop.f32.mrf.mxu1 }
  0xbd   :  { %v1941_v45 = vadd.f32 %v185_v44, %v81_v25 }
  0xc4   :  { %v188_v46 = vpop.f32.mrf.mxu1 }
  0xc5   :  { %v189_v48 = vadd.f32 %v188_v46, %v81_v25 }
  0xc7   :  { %v276_v49 = vadd.f32 %v273_v47, %v189_v48 }
  0xc9   :  { %1517 = vtanh.f32 %v276_v49  ;;  %v1474_v4 = vmul.f32 -1.442695, %v276_v49 }
  0xca   :  { %1519 = vpow2.f32 %v1473_v51 }
  0xcf   :  { %v1518_v50 = vpop.eup %1517 }
  0xd0   :  { %344 = vrot.lane.b32.xlu0 %v1518_v50, %s1734_s0  ;;  %v1520_v52 = vpop.eup %1519 }
  0xd1   :  { %v280_v53 = vadd.f32 1.0, %v1520_v52 }
  0xd3   :  { %1521 = vrcp.f32 %v280_v53  ;;  %vm286_vm2 = vweird.f32 %v280_v53  ;;  %v292_v58 = vand.u32 2147483648, %v280_v53  ;;  %v290_v60 = vand.u32 2147483647, %v280_v53 }
  0xd4   :  { %1523 = vpow2.f32 %v1474_v4 }
  0xd5   :  { %v293_v61 = vor.u32 1.1754944e-38, %v292_v58  ;;  %vm291_vm5 = vcmp.eq.f32.partialorder %v290_v60, 8.507059e+37 }
  0xd9   :  { %v1522_v54 = vpop.eup %1521 }
  0xda   :  { %v282_v55 = vmul.f32 %v1522_v54, %v280_v53  ;;  %vm287_vm3 = vweird.f32 %v1522_v54  ;;  %v1524_v6 = vpop.eup %1523 }
  0xdb   :  { %vm288_vm4 = vmor %vm286_vm2, %vm287_vm3  ;;  %v321_v7 = vadd.f32 1.0, %v1524_v6  ;;  %vm523_vm3 = vcmp.gt.s32.totalorder %v1954_v30, 1 }
  0xdc   :  { %v283_v56 = vsub.f32 1.0, %v282_v55 }
  0xdd   :  { %1525 = vrcp.f32 %v321_v7  ;;  %v333_v21 = vand.u32 2147483648, %v321_v7  ;;  %vm327_vm7 = vweird.f32 %v321_v7  ;;  %v331_v22 = vand.u32 2147483647, %v321_v7 }
  0xde   :  { %v284_v57 = vmul.f32 %v1522_v54, %v283_v56 }
  0xdf   :  { %v334_v24 = vor.u32 1.1754944e-38, %v333_v21  ;;  %vm332_vm9 = vcmp.eq.f32.partialorder %v331_v22, 8.507059e+37 }
  0xe0   :  { %v285_v59 = vadd.f32 %v1522_v54, %v284_v57 }
  0xe2   :  { %v289_v62 = vsel %vm288_vm4, %v1522_v54, %v285_v59 }
  0xe3   :  { %v1944_v63 = vsel %vm291_vm5, %v293_v61, %v289_v62  ;;  %v1526_v13 = vpop.eup %1525  ;;  %v129_v62 = vpop.f32.mrf.mxu0 }
  0xe4   :  { %v323_v17 = vmul.f32 %v1526_v13, %v321_v7  ;;  %vm328_vm6 = vweird.f32 %v1526_v13  ;;  %v301_v34 = vmul.f32 %v1960_v33, %v1944_v63 }
  0xe5   :  { %vm329_vm8 = vmor %vm327_vm7, %vm328_vm6 }
  0xe6   :  { %v324_v18 = vsub.f32 1.0, %v323_v17 }
  0xe8   :  { %v325_v19 = vmul.f32 %v1526_v13, %v324_v18 }
  0xea   :  { %v326_v20 = vadd.f32 %v1526_v13, %v325_v19 }
  0xec   :  { %v330_v23 = vsel %vm329_vm8, %v1526_v13, %v326_v20  ;;  %vm524_vm8 = vcmp.gt.s32.totalorder %v1954_v30, 6 }
  0xed   :  { %v335_v25 = vsel %vm332_vm9, %v334_v24, %v330_v23 }
 0x113   :  { %v304_v0 = vpop.permute.xlu0 %303 }
 0x114   :  { %v306_v2 = vmul.f32 %v304_v0, %v1944_v63 }
 0x116   :  { %308 = vrot.lane.b32.xlu2 %v306_v2, %s1733_s28 }
 0x142   :  { %v345_v26 = vpop.permute.xlu0 %344 }
 0x143   :  { %v347_v29 = vmul.f32 %v345_v26, %v335_v25 }
 0x145   :  { %349 = vrot.lane.b32.xlu2 %v347_v29, %s1733_s28 }
 0x14d   :  { %364 = vperm.xlu2 %1512, %v362_v31  }
 0x155   :  { %384 = vrot.lane.b32.xlu2 %v1877_v16, %s1736_s19  ;;  %v342_v16 = vmul.f32 %v1970_v42, %v335_v25 }
 0x170   :  { %v309_v35 = vpop.permute.xlu2 %308 }
 0x171   :  { %v1964_v37 = vadd.f32 %v309_v35, %v301_v34 }
 0x173   :  { %1527 = vtanh.f32 %v1964_v37 }
 0x179   :  { %v1528_v38 = vpop.eup %1527 }
 0x17a   :  { %314 = vrot.lane.b32.xlu0 %v1528_v38, %s1734_s0 }
 0x182   :  { %372 = vperm.xlu0 %1513, %v370_v40   ;;  %v526_v40 = vsel %vm523_vm3, 1, %v1735_v10 }
 0x19f   :  { %v350_v44 = vpop.permute.xlu2 %349 }
 0x1a0   :  { %v1973_v46 = vadd.f32 %v350_v44, %v342_v16 }
 0x1a2   :  { %1529 = vtanh.f32 %v1973_v46 }
 0x1a7   :  { %v1978_v49 = vpop.permute.xlu2 %364 }
 0x1a8   :  { %v1530_v47 = vpop.eup %1529  ;;  %vm2454_vm13 = vcmp.eq.s32.totalorder %v1978_v49, 1 }
 0x1a9   :  { %355 = vrot.lane.b32.xlu1 %v1530_v47, %s1734_s0 }
 0x1af   :  { %v385_v52 = vpop.permute.xlu2 %384 }
 0x1b1   :  { %379 = vrot.lane.b32.xlu1 %v1841_v9, %s1736_s19 }
 0x1ec   :  { %v315_v48 = vpop.permute.xlu0 %314 }
 0x1ed   :  { %v1993_v9 = vmul.f32 %v315_v48, %v1944_v63  ;;  %v130_v63 = vadd.f32 %v129_v62, %v1927_v28 }
 0x1ef   :  { %vm361_vm9 = vcmp.ne.f32.partialorder %v1993_v9, 0.0 }
 0x1f0   :  { %vm367_vm10 = vmand %vm2454_vm13, %vm361_vm9 }
 0x1f4   :  { %v1980_v50 = vpop.permute.xlu0 %372 }
 0x1f5   :  { %vm374_vm12 = vcmp.eq.s32.totalorder %v1980_v50, 1 }
 0x21b   :  { %v356_v51 = vpop.permute.xlu1 %355 }
 0x21c   :  { %v1982_v53 = vmul.f32 %v356_v51, %v335_v25 }
 0x21e   :  { %v1988_v54 = vsel %vm374_vm12, %v1982_v53, %v385_v52  ;;  %vm369_vm11 = vcmp.ne.f32.partialorder %v1982_v53, 0.0 }
 0x21f   :  { %424 = vrot.lane.b32.xlu2 %v1988_v54, %s1733_s28 }
 0x223   :  { %v380_v55 = vpop.permute.xlu1 %379 }
 0x224   :  { %v1999_v56 = vsel %vm2454_vm13, %v1993_v9, %v380_v55 }
 0x225   :  { %394 = vrot.lane.b32.xlu1 %v1999_v56, %s1733_s28 }
 0x279   :  { %v425_v57 = vpop.permute.xlu2 %424 }
 0x27a   :  { %1476 = vmatmul.msk.f32.vlgmr.msrb.gmra.mxu3 %vm224_vm1, %v425_v57 }
 0x27b   :  { %756 = vmatpush.msrb.mxu3 %v1853_v11 }
 0x27d   :  { %757 = vmatpush.msrb.mxu3 %v1855_v12 }
 0x27f   :  { %758 = vmatpush.msrb.mxu3 %v1868_v14 }
 0x281   :  { %759 = vmatpush.msrb.mxu3 %v1870_v15 }
 0x297   :  { %v395_v58 = vpop.permute.xlu1 %394 }
 0x298   :  { %1475 = vmatmul.msk.f32.vlgmr.msrb.gmra.mxu2 %vm224_vm1, %v395_v58 }
 0x299   :  { %726 = vmatpush.msrb.mxu2 %v1805_v1 }
 0x29b   :  { %727 = vmatpush.msrb.mxu2 %v1814_v3 }
 0x29d   :  { %728 = vmatpush.msrb.mxu2 %v1822_v5 }
 0x29f   :  { %729 = vmatpush.msrb.mxu2 %v1835_v8 }
 0x2fd   :  { %v445_v59 = vpop.f32.mrf.mxu3 }
 0x2fe   :  { %v448_v60 = vadd.f32 %v445_v59, %v1941_v45 }
 0x300   :  { %1531 = vtanh.f32 %v448_v60  ;;  %v1478_v6 = vmul.f32 -1.442695, %v448_v60 }
 0x306   :  { %v1532_v61 = vpop.eup %1531 }
 0x307   :  { %508 = vrot.lane.b32.xlu1 %v1532_v61, %s1734_s0  ;;  %v2025_v61 = vsel %vm374_vm12, %v1973_v46, %v1970_v42 }
 0x31b   :  { %v415_v0 = vpop.f32.mrf.mxu2 }
 0x31c   :  { %v418_v2 = vadd.f32 %v415_v0, %v130_v63 }
 0x31e   :  { %1533 = vtanh.f32 %v418_v2  ;;  %v1477_v18 = vmul.f32 -1.442695, %v418_v2  ;;  %v2035_v2 = vsel %vm2454_vm13, %v1964_v37, %v1960_v33 }
 0x31f   :  { %1535 = vpow2.f32 %v1478_v6 }
 0x324   :  { %v1534_v4 = vpop.eup %1533 }
 0x325   :  { %471 = vrot.lane.b32.xlu0 %v1534_v4, %s1734_s0  ;;  %v1536_v7 = vpop.eup %1535 }
 0x326   :  { %v489_v13 = vadd.f32 1.0, %v1536_v7 }
 0x328   :  { %1537 = vrcp.f32 %v489_v13  ;;  %v501_v22 = vand.u32 2147483648, %v489_v13  ;;  %vm495_vm15 = vweird.f32 %v489_v13  ;;  %v499_v24 = vand.u32 2147483647, %v489_v13 }
 0x329   :  { %1539 = vpow2.f32 %v1477_v18 }
 0x32a   :  { %v502_v29 = vor.u32 1.1754944e-38, %v501_v22  ;;  %vm500_vm2 = vcmp.eq.f32.partialorder %v499_v24, 8.507059e+37 }
 0x32e   :  { %v1538_v17 = vpop.eup %1537 }
 0x32f   :  { %v491_v45 = vmul.f32 %v1538_v17, %v489_v13  ;;  %vm496_vm14 = vweird.f32 %v1538_v17  ;;  %v1540_v23 = vpop.eup %1539  ;;  %v534_v13 = vsel %vm524_vm8, 1, %v1735_v10 }
 0x330   :  { %vm497_vm0 = vmor %vm495_vm15, %vm496_vm14  ;;  %v452_v26 = vadd.f32 1.0, %v1540_v23 }
 0x331   :  { %v492_v19 = vsub.f32 1.0, %v491_v45  ;;  %vm375_vm15 = vmand %vm374_vm12, %vm369_vm11 }
 0x332   :  { %1541 = vrcp.f32 %v452_v26  ;;  %v464_v51 = vand.u32 2147483648, %v452_v26  ;;  %vm458_vm5 = vweird.f32 %v452_v26  ;;  %v462_v52 = vand.u32 2147483647, %v452_v26 }
 0x333   :  { %v493_v20 = vmul.f32 %v1538_v17, %v492_v19  ;;  %v376_v23 = vsel %vm375_vm15, %v1982_v53, -1e+09 }
 0x334   :  { %v465_v57 = vor.u32 1.1754944e-38, %v464_v51  ;;  %vm463_vm7 = vcmp.eq.f32.partialorder %v462_v52, 8.507059e+37 }
 0x335   :  { %v494_v21 = vadd.f32 %v1538_v17, %v493_v20 }
 0x337   :  { %v498_v25 = vsel %vm497_vm0, %v1538_v17, %v494_v21  ;;  %v368_v17 = vsel %vm367_vm10, %v1993_v9, -1e+09 }
 0x338   :  { %v503_v34 = vsel %vm500_vm2, %v502_v29, %v498_v25  ;;  %v1542_v38 = vpop.eup %1541  ;;  %v377_v20 = vmax.f32 %v368_v17, -1e+09 }
 0x339   :  { %v454_v16 = vmul.f32 %v1542_v38, %v452_v26  ;;  %vm459_vm4 = vweird.f32 %v1542_v38  ;;  %v506_v62 = vmul.f32 %v503_v34, %v2025_v61 }
 0x33a   :  { %vm460_vm6 = vmor %vm458_vm5, %vm459_vm4 }
 0x33b   :  { %v455_v44 = vsub.f32 1.0, %v454_v16 }
 0x33d   :  { %v456_v47 = vmul.f32 %v1542_v38, %v455_v44 }
 0x33f   :  { %v457_v48 = vadd.f32 %v1542_v38, %v456_v47 }
 0x341   :  { %v461_v55 = vsel %vm460_vm6, %v1542_v38, %v457_v48 }
 0x342   :  { %v466_v58 = vsel %vm463_vm7, %v465_v57, %v461_v55 }
 0x343   :  { %v469_v4 = vmul.f32 %v466_v58, %v2035_v2 }
 0x379   :  { %v509_v31 = vpop.permute.xlu1 %508 }
 0x37a   :  { %v511_v35 = vmul.f32 %v509_v31, %v503_v34 }
 0x37c   :  { %513 = vrot.lane.b32.xlu0 %v511_v35, %s1733_s28 }
 0x384   :  { %528 = vperm.xlu0 %1513, %v526_v40  }
 0x397   :  { %v472_v59 = vpop.permute.xlu0 %471 }
 0x398   :  { %v474_v60 = vmul.f32 %v472_v59, %v466_v58 }
 0x39a   :  { %476 = vrot.lane.b32.xlu2 %v474_v60, %s1733_s28 }
 0x3ee   :  { %v514_v63 = vpop.permute.xlu0 %513 }
 0x3ef   :  { %v2028_v0 = vadd.f32 %v514_v63, %v506_v62 }
 0x3f1   :  { %1543 = vtanh.f32 %v2028_v0 }
 0x3f4   :  { %v477_v6 = vpop.permute.xlu2 %476 }
 0x3f5   :  { %v2038_v7 = vadd.f32 %v477_v6, %v469_v4 }
 0x3f6   :  { %v2048_v33 = vpop.permute.xlu0 %528 }
 0x3f7   :  { %v1544_v42 = vpop.eup %1543  ;;  %1545 = vtanh.f32 %v2038_v7  ;;  %vm530_vm14 = vcmp.eq.s32.totalorder %v2048_v33, 1 }
 0x3f8   :  { %519 = vrot.lane.b32.xlu2 %v1544_v42, %s1734_s0 }
 0x3fd   :  { %v1546_v46 = vpop.eup %1545 }
 0x3fe   :  { %482 = vrot.lane.b32.xlu1 %v1546_v46, %s1734_s0 }
 0x406   :  { %536 = vperm.xlu1 %1514, %v534_v13  }
 0x452   :  { %v520_v18 = vpop.permute.xlu2 %519 }
 0x453   :  { %v522_v9 = vmul.f32 %v520_v18, %v503_v34 }
 0x455   :  { %vm533_vm3 = vcmp.ne.f32.partialorder %v522_v9, 0.0 }
 0x470   :  { %v483_v37 = vpop.permute.xlu1 %482 }
 0x471   :  { %v485_v45 = vmul.f32 %v483_v37, %v466_v58 }
 0x473   :  { %vm525_vm0 = vcmp.ne.f32.partialorder %v485_v45, 0.0  ;;  %v2058_v19 = vsel %vm530_vm14, %v485_v45, %v1999_v56  ;;  %v378_v56 = vmax.f32 %v376_v23, -1e+09 }
 0x474   :  { %vm531_vm2 = vmand %vm530_vm14, %vm525_vm0  ;;  %552 = vrot.lane.b32.xlu2 %v2058_v19, %s1733_s28 }
 0x475   :  { %v532_v21 = vsel %vm531_vm2, %v485_v45, -1e+09  ;;  %vm681_vm2 = vcmp.gt.s32.totalorder %v1954_v30, 2 }
 0x476   :  { %v2064_v22 = vmax.f32 %v377_v20, %v532_v21 }
 0x478   :  { %v2067_v24 = vpop.permute.xlu1 %536 }
 0x479   :  { %vm538_vm4 = vcmp.eq.s32.totalorder %v2067_v24, 1 }
 0x47a   :  { %vm539_vm5 = vmand %vm538_vm4, %vm533_vm3  ;;  %v2075_v25 = vsel %vm538_vm4, %v522_v9, %v1988_v54  ;;  %v132_v54 = vpop.f32.mrf.mxu0  ;;  %vm682_vm3 = vcmp.gt.s32.totalorder %v1954_v30, 5 }
 0x47b   :  { %582 = vrot.lane.b32.xlu0 %v2075_v25, %s1733_s28  ;;  %v540_v26 = vsel %vm539_vm5, %v522_v9, -1e+09  ;;  %v133_v34 = vadd.f32 %v132_v54, %v1927_v28 }
 0x47c   :  { %v2079_v29 = vmax.f32 %v378_v56, %v540_v26 }
 0x4ce   :  { %v553_v53 = vpop.permute.xlu2 %552 }
 0x4cf   :  { %1479 = vmatmul.msk.f32.vlgmr.msra.gmra.mxu2 %vm224_vm1, %v553_v53 }
 0x4d0   :  { %881 = vmatpush.msra.mxu2 %v1805_v1 }
 0x4d2   :  { %882 = vmatpush.msra.mxu2 %v1814_v3 }
 0x4d4   :  { %883 = vmatpush.msra.mxu2 %v1822_v5 }
 0x4d6   :  { %884 = vmatpush.msra.mxu2 %v1835_v8 }
 0x4ed   :  { %v583_v31 = vpop.permute.xlu0 %582 }
 0x4ee   :  { %1480 = vmatmul.msk.f32.vlgmr.msra.gmra.mxu3 %vm224_vm1, %v583_v31 }
 0x4ef   :  { %908 = vmatpush.msra.mxu3 %v1853_v11 }
 0x4f1   :  { %909 = vmatpush.msra.mxu3 %v1855_v12 }
 0x4f3   :  { %910 = vmatpush.msra.mxu3 %v1868_v14 }
 0x4f5   :  { %911 = vmatpush.msra.mxu3 %v1870_v15 }
 0x552   :  { %v573_v35 = vpop.f32.mrf.mxu2 }
 0x553   :  { %v576_v38 = vadd.f32 %v573_v35, %v133_v34  ;;  %v684_v35 = vsel %vm681_vm2, 1, %v1735_v10 }
 0x555   :  { %1547 = vtanh.f32 %v576_v38  ;;  %v1481_v48 = vmul.f32 -1.442695, %v576_v38  ;;  %v2103_v38 = vsel %vm530_vm14, %v2038_v7, %v2035_v2  ;;  %v692_v7 = vsel %vm682_vm3, 1, %v1735_v10 }
 0x55b   :  { %v1548_v40 = vpop.eup %1547 }
 0x55c   :  { %629 = vrot.lane.b32.xlu1 %v1548_v40, %s1734_s0 }
 0x571   :  { %v603_v16 = vpop.f32.mrf.mxu3 }
 0x572   :  { %v606_v44 = vadd.f32 %v603_v16, %v1939_v43 }
 0x574   :  { %1549 = vtanh.f32 %v606_v44  ;;  %v1482_v51 = vmul.f32 -1.442695, %v606_v44 }
 0x575   :  { %1551 = vpow2.f32 %v1481_v48 }
 0x576   :  { %1553 = vpow2.f32 %v1482_v51 }
 0x57a   :  { %v1550_v47 = vpop.eup %1549 }
 0x57b   :  { %666 = vrot.lane.b32.xlu2 %v1550_v47, %s1734_s0  ;;  %v1552_v52 = vpop.eup %1551  ;;  %v2113_v47 = vsel %vm538_vm4, %v2028_v0, %v2025_v61 }
 0x57c   :  { %v610_v55 = vadd.f32 1.0, %v1552_v52  ;;  %v1554_v57 = vpop.eup %1553 }
 0x57d   :  { %v647_v58 = vadd.f32 1.0, %v1554_v57 }
 0x57e   :  { %1555 = vrcp.f32 %v610_v55  ;;  %v622_v46 = vand.u32 2147483648, %v610_v55  ;;  %vm616_vm7 = vweird.f32 %v610_v55  ;;  %v620_v13 = vand.u32 2147483647, %v610_v55 }
 0x57f   :  { %1557 = vrcp.f32 %v647_v58  ;;  %v659_v23 = vand.u32 2147483648, %v647_v58  ;;  %vm653_vm11 = vweird.f32 %v647_v58  ;;  %v657_v56 = vand.u32 2147483647, %v647_v58 }
 0x580   :  { %v623_v45 = vor.u32 1.1754944e-38, %v622_v46  ;;  %vm621_vm9 = vcmp.eq.f32.partialorder %v620_v13, 8.507059e+37 }
 0x581   :  { %v660_v53 = vor.u32 1.1754944e-38, %v659_v23  ;;  %vm658_vm0 = vcmp.eq.f32.partialorder %v657_v56, 8.507059e+37 }
 0x584   :  { %v1556_v59 = vpop.eup %1555 }
 0x585   :  { %v612_v60 = vmul.f32 %v1556_v59, %v610_v55  ;;  %v1558_v62 = vpop.eup %1557  ;;  %vm617_vm6 = vweird.f32 %v1556_v59 }
 0x586   :  { %v649_v4 = vmul.f32 %v1558_v62, %v647_v58  ;;  %vm618_vm8 = vmor %vm616_vm7, %vm617_vm6  ;;  %vm654_vm10 = vweird.f32 %v1558_v62 }
 0x587   :  { %v613_v63 = vsub.f32 1.0, %v612_v60  ;;  %vm655_vm15 = vmor %vm653_vm11, %vm654_vm10 }
 0x588   :  { %v650_v6 = vsub.f32 1.0, %v649_v4 }
 0x589   :  { %v614_v43 = vmul.f32 %v1556_v59, %v613_v63 }
 0x58a   :  { %v651_v37 = vmul.f32 %v1558_v62, %v650_v6 }
 0x58b   :  { %v615_v42 = vadd.f32 %v1556_v59, %v614_v43 }
 0x58c   :  { %v652_v9 = vadd.f32 %v1558_v62, %v651_v37 }
 0x58d   :  { %v619_v17 = vsel %vm618_vm8, %v1556_v59, %v615_v42 }
 0x58e   :  { %v624_v20 = vsel %vm621_vm9, %v623_v45, %v619_v17  ;;  %v656_v26 = vsel %vm655_vm15, %v1558_v62, %v652_v9 }
 0x58f   :  { %v661_v54 = vsel %vm658_vm0, %v660_v53, %v656_v26  ;;  %v627_v40 = vmul.f32 %v624_v20, %v2103_v38 }
 0x590   :  { %v664_v48 = vmul.f32 %v661_v54, %v2113_v47 }
 0x5ce   :  { %v630_v18 = vpop.permute.xlu1 %629 }
 0x5cf   :  { %v632_v21 = vmul.f32 %v630_v18, %v624_v20 }
 0x5d1   :  { %634 = vrot.lane.b32.xlu0 %v632_v21, %s1733_s28 }
 0x5d5   :  { %v667_v31 = vpop.permute.xlu2 %666 }
 0x5d6   :  { %v669_v34 = vmul.f32 %v667_v31, %v661_v54 }
 0x5d8   :  { %671 = vrot.lane.b32.xlu1 %v669_v34, %s1733_s28 }
 0x5e0   :  { %686 = vperm.xlu1 %1514, %v684_v35  }
 0x643   :  { %v635_v16 = vpop.permute.xlu0 %634 }
 0x644   :  { %v2106_v44 = vadd.f32 %v635_v16, %v627_v40 }
 0x646   :  { %1559 = vtanh.f32 %v2106_v44 }
 0x64a   :  { %v672_v51 = vpop.permute.xlu1 %671 }
 0x64b   :  { %v2116_v52 = vadd.f32 %v672_v51, %v664_v48 }
 0x64c   :  { %v1560_v2 = vpop.eup %1559 }
 0x64d   :  { %1561 = vtanh.f32 %v2116_v52  ;;  %640 = vrot.lane.b32.xlu2 %v1560_v2, %s1734_s0 }
 0x652   :  { %v2123_v61 = vpop.permute.xlu1 %686 }
 0x653   :  { %v1562_v55 = vpop.eup %1561  ;;  %vm688_vm5 = vcmp.eq.s32.totalorder %v2123_v61, 1 }
 0x654   :  { %677 = vrot.lane.b32.xlu0 %v1562_v55, %s1734_s0 }
 0x655   :  { %694 = vperm.xlu2 %1512, %v692_v7  }
 0x6a7   :  { %v641_v0 = vpop.permute.xlu2 %640 }
 0x6a8   :  { %v643_v57 = vmul.f32 %v641_v0, %v624_v20 }
 0x6aa   :  { %vm683_vm6 = vcmp.ne.f32.partialorder %v643_v57, 0.0  ;;  %v2129_v58 = vsel %vm688_vm5, %v643_v57, %v2058_v19 }
 0x6ab   :  { %vm689_vm7 = vmand %vm688_vm5, %vm683_vm6  ;;  %710 = vrot.lane.b32.xlu0 %v2129_v58, %s1733_s28 }
 0x6ac   :  { %v690_v59 = vsel %vm689_vm7, %v643_v57, -1e+09 }
 0x6ad   :  { %v2136_v60 = vmax.f32 %v2064_v22, %v690_v59 }
 0x6af   :  { %v2138_v62 = vpop.permute.xlu2 %694 }
 0x6b0   :  { %vm696_vm8 = vcmp.eq.s32.totalorder %v2138_v62, 1 }
 0x6c6   :  { %v678_v63 = vpop.permute.xlu0 %677 }
 0x6c7   :  { %v680_v4 = vmul.f32 %v678_v63, %v661_v54 }
 0x6c9   :  { %vm691_vm9 = vcmp.ne.f32.partialorder %v680_v4, 0.0  ;;  %v2144_v19 = vsel %vm696_vm8, %v680_v4, %v2075_v25 }
 0x6ca   :  { %vm697_vm10 = vmand %vm696_vm8, %vm691_vm9  ;;  %740 = vrot.lane.b32.xlu1 %v2144_v19, %s1733_s28 }
 0x6cb   :  { %v698_v22 = vsel %vm697_vm10, %v680_v4, -1e+09  ;;  %vm839_vm10 = vcmp.gt.s32.totalorder %v1954_v30, 3 }
 0x6cc   :  { %v2151_v43 = vmax.f32 %v2079_v29, %v698_v22  ;;  %v135_v29 = vpop.f32.mrf.mxu0 }
 0x71d   :  { %v711_v6 = vpop.permute.xlu0 %710 }
 0x71e   :  { %1483 = vmatmul.msk.f32.vlgmr.msrb.gmra.mxu2 %vm224_vm1, %v711_v6 }
 0x71f   :  { %1021 = vmatpush.msrb.mxu2 %v1805_v1  ;;  %v136_v1 = vadd.f32 %v135_v29, %v1927_v28  ;;  %v2175_v29 = vsel %vm688_vm5, %v2106_v44, %v2103_v38  ;;  %v2188_v38 = vsel %vm696_vm8, %v2116_v52, %v2113_v47 }
 0x721   :  { %1022 = vmatpush.msrb.mxu2 %v1814_v3 }
 0x723   :  { %1023 = vmatpush.msrb.mxu2 %v1822_v5 }
 0x725   :  { %1024 = vmatpush.msrb.mxu2 %v1835_v8 }
 0x73c   :  { %v741_v25 = vpop.permute.xlu1 %740 }
 0x73d   :  { %1484 = vmatmul.msk.f32.vlgmr.msrb.gmra.mxu3 %vm224_vm1, %v741_v25  ;;  %v842_v25 = vsel %vm839_vm10, 1, %v1735_v10 }
 0x73e   :  { %1048 = vmatpush.msrb.mxu3 %v1853_v11 }
 0x740   :  { %1049 = vmatpush.msrb.mxu3 %v1855_v12 }
 0x742   :  { %1050 = vmatpush.msrb.mxu3 %v1868_v14 }
 0x744   :  { %1051 = vmatpush.msrb.mxu3 %v1870_v15 }
 0x7a1   :  { %v731_v42 = vpop.f32.mrf.mxu2 }
 0x7a2   :  { %v734_v3 = vadd.f32 %v731_v42, %v136_v1 }
 0x7a4   :  { %1563 = vtanh.f32 %v734_v3  ;;  %v1485_v37 = vmul.f32 -1.442695, %v734_v3 }
 0x7aa   :  { %v1564_v5 = vpop.eup %1563 }
 0x7ab   :  { %787 = vrot.lane.b32.xlu2 %v1564_v5, %s1734_s0 }
 0x7c0   :  { %v761_v8 = vpop.f32.mrf.mxu3 }
 0x7c1   :  { %v764_v46 = vadd.f32 %v761_v8, %v1937_v41 }
 0x7c3   :  { %1565 = vtanh.f32 %v764_v46  ;;  %v1486_v35 = vmul.f32 -1.442695, %v764_v46 }
 0x7c4   :  { %1567 = vpow2.f32 %v1485_v37 }
 0x7c9   :  { %v1566_v13 = vpop.eup %1565 }
 0x7ca   :  { %824 = vrot.lane.b32.xlu0 %v1566_v13, %s1734_s0  ;;  %v1568_v17 = vpop.eup %1567 }
 0x7cb   :  { %v768_v45 = vadd.f32 1.0, %v1568_v17 }
 0x7cd   :  { %1569 = vrcp.f32 %v768_v45  ;;  %v780_v56 = vand.u32 2147483648, %v768_v45  ;;  %vm774_vm15 = vweird.f32 %v768_v45  ;;  %v778_v26 = vand.u32 2147483647, %v768_v45 }
 0x7ce   :  { %1571 = vpow2.f32 %v1486_v35 }
 0x7cf   :  { %v781_v53 = vor.u32 1.1754944e-38, %v780_v56  ;;  %vm779_vm2 = vcmp.eq.f32.partialorder %v778_v26, 8.507059e+37  ;;  %v2229_v56 = vld [vmem:[%s2447_s4 + $0x18] sm:$0xff] }
 0x7d3   :  { %v1570_v18 = vpop.eup %1569 }
 0x7d4   :  { %v770_v20 = vmul.f32 %v1570_v18, %v768_v45  ;;  %vm775_vm11 = vweird.f32 %v1570_v18  ;;  %v1572_v40 = vpop.eup %1571 }
 0x7d5   :  { %vm776_vm0 = vmor %vm774_vm15, %vm775_vm11  ;;  %v805_v16 = vadd.f32 1.0, %v1572_v40  ;;  %vm840_vm11 = vcmp.gt.s32.totalorder %v1954_v30, 4 }
 0x7d6   :  { %v771_v9 = vsub.f32 1.0, %v770_v20  ;;  %v850_v8 = vsel %vm840_vm11, 1, %v1735_v10 }
 0x7d7   :  { %1573 = vrcp.f32 %v805_v16  ;;  %v817_v0 = vand.u32 2147483648, %v805_v16  ;;  %vm811_vm6 = vweird.f32 %v805_v16  ;;  %v815_v57 = vand.u32 2147483647, %v805_v16 }
 0x7d8   :  { %v772_v21 = vmul.f32 %v1570_v18, %v771_v9 }
 0x7d9   :  { %v818_v63 = vor.u32 1.1754944e-38, %v817_v0  ;;  %vm816_vm9 = vcmp.eq.f32.partialorder %v815_v57, 8.507059e+37 }
 0x7da   :  { %v773_v23 = vadd.f32 %v1570_v18, %v772_v21 }
 0x7dc   :  { %v777_v41 = vsel %vm776_vm0, %v1570_v18, %v773_v23 }
 0x7dd   :  { %v782_v54 = vsel %vm779_vm2, %v781_v53, %v777_v41  ;;  %v1574_v48 = vpop.eup %1573  ;;  %v2248_v41 = vld [vmem:[%s2447_s4] sm:$0xff]  ;;  %v138_v53 = vpop.f32.mrf.mxu0 }
 0x7de   :  { %v807_v51 = vmul.f32 %v1574_v48, %v805_v16  ;;  %vm812_vm3 = vweird.f32 %v1574_v48  ;;  %v785_v1 = vmul.f32 %v782_v54, %v2175_v29 }
 0x7df   :  { %vm813_vm7 = vmor %vm811_vm6, %vm812_vm3 }
 0x7e0   :  { %v808_v2 = vsub.f32 1.0, %v807_v51 }
 0x7e2   :  { %v809_v7 = vmul.f32 %v1574_v48, %v808_v2 }
 0x7e4   :  { %v810_v55 = vadd.f32 %v1574_v48, %v809_v7 }
 0x7e6   :  { %v814_v59 = vsel %vm813_vm7, %v1574_v48, %v810_v55 }
 0x7e7   :  { %v819_v4 = vsel %vm816_vm9, %v818_v63, %v814_v59 }
 0x7e8   :  { %v822_v44 = vmul.f32 %v819_v4, %v2188_v38 }
 0x805   :  { %v788_v31 = vpop.permute.xlu2 %787 }
 0x806   :  { %v790_v34 = vmul.f32 %v788_v31, %v782_v54  ;;  %v139_v31 = vadd.f32 %v138_v53, %v1927_v28 }
 0x808   :  { %792 = vrot.lane.b32.xlu1 %v790_v34, %s1733_s28 }
 0x83c   :  { %v825_v22 = vpop.permute.xlu0 %824 }
 0x83d   :  { %v827_v6 = vmul.f32 %v825_v22, %v819_v4 }
 0x83f   :  { %829 = vrot.lane.b32.xlu2 %v827_v6, %s1733_s28 }
 0x847   :  { %844 = vperm.xlu2 %1512, %v842_v25  }
 0x87a   :  { %v793_v42 = vpop.permute.xlu1 %792 }
 0x87b   :  { %v2178_v3 = vadd.f32 %v793_v42, %v785_v1 }
 0x87d   :  { %1575 = vtanh.f32 %v2178_v3 }
 0x883   :  { %v1576_v5 = vpop.eup %1575 }
 0x884   :  { %798 = vrot.lane.b32.xlu0 %v1576_v5, %s1734_s0 }
 0x88c   :  { %852 = vperm.xlu0 %1513, %v850_v8  }
 0x899   :  { %v830_v46 = vpop.permute.xlu2 %829 }
 0x89a   :  { %v2191_v13 = vadd.f32 %v830_v46, %v822_v44 }
 0x89c   :  { %1577 = vtanh.f32 %v2191_v13 }
 0x8a1   :  { %v2195_v30 = vpop.permute.xlu2 %844 }
 0x8a2   :  { %v1578_v37 = vpop.eup %1577  ;;  %vm846_vm15 = vcmp.eq.s32.totalorder %v2195_v30, 1 }
 0x8a3   :  { %835 = vrot.lane.b32.xlu1 %v1578_v37, %s1734_s0 }
 0x8f6   :  { %v799_v10 = vpop.permute.xlu0 %798 }
 0x8f7   :  { %v801_v17 = vmul.f32 %v799_v10, %v782_v54 }
 0x8f9   :  { %vm841_vm0 = vcmp.ne.f32.partialorder %v801_v17, 0.0  ;;  %v2201_v47 = vsel %vm846_vm15, %v801_v17, %v2129_v58 }
 0x8fa   :  { %vm847_vm2 = vmand %vm846_vm15, %vm841_vm0  ;;  %865 = vrot.lane.b32.xlu1 %v2201_v47, %s1733_s28 }
 0x8fb   :  { %v848_v52 = vsel %vm847_vm2, %v801_v17, -1e+09 }
 0x8fc   :  { %v2208_v45 = vmax.f32 %v2136_v60, %v848_v52 }
 0x8fe   :  { %v2210_v18 = vpop.permute.xlu0 %852 }
 0x8ff   :  { %vm854_vm3 = vcmp.eq.s32.totalorder %v2210_v18, 1 }
 0x915   :  { %v836_v20 = vpop.permute.xlu1 %835 }
 0x916   :  { %v838_v9 = vmul.f32 %v836_v20, %v819_v4 }
 0x918   :  { %vm849_vm6 = vcmp.ne.f32.partialorder %v838_v9, 0.0  ;;  %v2216_v58 = vsel %vm854_vm3, %v838_v9, %v2144_v19  ;;  %v2235_v19 = vld [vmem:[%s2447_s4 + $0x10] sm:$0xff] }
 0x919   :  { %vm855_vm7 = vmand %vm854_vm3, %vm849_vm6  ;;  %892 = vrot.lane.b32.xlu2 %v2216_v58, %s1733_s28 }
 0x91a   :  { %v856_v60 = vsel %vm855_vm7, %v838_v9, -1e+09 }
 0x91b   :  { %v2223_v21 = vmax.f32 %v2151_v43, %v856_v60  ;;  %v2241_v43 = vld [vmem:[%s2447_s4 + $0x8] sm:$0xff]  ;;  %s1737_s4 = smov [#allocation8]  }
 0x91c   :  { %s1435_s3 = sshll.u32 %s1737_s4, 4  ;;  %s1436_s3 = int_to_ptr.vmem [resolvable:$true] %s1435_s3 }
 0x96c   :  { %v866_v23 = vpop.permute.xlu1 %865 }
 0x96d   :  { %1487 = vmatmul.msk.f32.vlgmr.msra.gmra.mxu2 %vm224_vm1, %v866_v23  ;;  %v2265_v23 = vsel %vm846_vm15, %v2178_v3, %v2175_v29 }
 0x96e   :  { %1161 = vmatpush.msra.mxu2 %v2229_v56 }
 0x970   :  { %1162 = vmatpush.msra.mxu2 %v2235_v19 }
 0x972   :  { %1163 = vmatpush.msra.mxu2 %v2241_v43 }
 0x973   :  { %v893_v26 = vpop.permute.xlu2 %892 }
 0x974   :  { %1488 = vmatmul.msk.f32.vlgmr.msra.gmra.mxu3 %vm224_vm1, %v893_v26  ;;  %1164 = vmatpush.msra.mxu2 %v2248_v41 }
 0x975   :  { %1188 = vmatpush.msra.mxu3 %v1853_v11 }
 0x977   :  { %1189 = vmatpush.msra.mxu3 %v1855_v12 }
 0x979   :  { %1190 = vmatpush.msra.mxu3 %v1868_v14 }
 0x97b   :  { %1191 = vmatpush.msra.mxu3 %v1870_v15 }
 0x9f0   :  { %v886_v54 = vpop.f32.mrf.mxu2 }
 0x9f1   :  { %v889_v34 = vadd.f32 %v886_v54, %v139_v31 }
 0x9f3   :  { %1579 = vtanh.f32 %v889_v34  ;;  %v1489_v12 = vmul.f32 -1.442695, %v889_v34  ;;  %v2276_v34 = vsel %vm854_vm3, %v2191_v13, %v2188_v38 }
 0x9f7   :  { %v913_v35 = vpop.f32.mrf.mxu3 }
 0x9f8   :  { %v916_v40 = vadd.f32 %v913_v35, %v1935_v39 }
 0x9f9   :  { %v1580_v16 = vpop.eup %1579 }
 0x9fa   :  { %1581 = vtanh.f32 %v916_v40  ;;  %939 = vrot.lane.b32.xlu0 %v1580_v16, %s1734_s0  ;;  %v1490_v14 = vmul.f32 -1.442695, %v916_v40 }
 0x9fb   :  { %1583 = vpow2.f32 %v1489_v12 }
 0x9fc   :  { %1585 = vpow2.f32 %v1490_v14 }
 0xa00   :  { %v1582_v11 = vpop.eup %1581 }
 0xa01   :  { %976 = vrot.lane.b32.xlu1 %v1582_v11, %s1734_s0  ;;  %v1584_v15 = vpop.eup %1583 }
 0xa02   :  { %v920_v48 = vadd.f32 1.0, %v1584_v15  ;;  %v1586_v51 = vpop.eup %1585 }
 0xa03   :  { %v957_v2 = vadd.f32 1.0, %v1586_v51 }
 0xa04   :  { %1587 = vrcp.f32 %v920_v48  ;;  %v932_v22 = vand.u32 2147483648, %v920_v48  ;;  %vm926_vm10 = vweird.f32 %v920_v48  ;;  %v930_v6 = vand.u32 2147483647, %v920_v48 }
 0xa05   :  { %1589 = vrcp.f32 %v957_v2  ;;  %v969_v37 = vand.u32 2147483648, %v957_v2  ;;  %vm963_vm6 = vweird.f32 %v957_v2  ;;  %v967_v10 = vand.u32 2147483647, %v957_v2 }
 0xa06   :  { %v933_v42 = vor.u32 1.1754944e-38, %v932_v22  ;;  %vm931_vm0 = vcmp.eq.f32.partialorder %v930_v6, 8.507059e+37 }
 0xa07   :  { %v970_v52 = vor.u32 1.1754944e-38, %v969_v37  ;;  %vm968_vm13 = vcmp.eq.f32.partialorder %v967_v10, 8.507059e+37 }
 0xa0a   :  { %v1588_v7 = vpop.eup %1587 }
 0xa0b   :  { %v922_v55 = vmul.f32 %v1588_v7, %v920_v48  ;;  %v1590_v39 = vpop.eup %1589  ;;  %vm927_vm9 = vweird.f32 %v1588_v7 }
 0xa0c   :  { %v959_v57 = vmul.f32 %v1590_v39, %v957_v2  ;;  %vm928_vm11 = vmor %vm926_vm10, %vm927_vm9  ;;  %vm964_vm2 = vweird.f32 %v1590_v39  ;;  %v1647_v2 = vld [vmem:[#allocation6 + $0x18] sm:$0xff] }
 0xa0d   :  { %v923_v0 = vsub.f32 1.0, %v922_v55  ;;  %vm965_vm7 = vmor %vm963_vm6, %vm964_vm2  ;;  %v1650_v55 = vld [vmem:[#allocation6] sm:$0xff] }
 0xa0e   :  { %v960_v63 = vsub.f32 1.0, %v959_v57 }
 0xa0f   :  { %v924_v59 = vmul.f32 %v1588_v7, %v923_v0 }
 0xa10   :  { %v961_v25 = vmul.f32 %v1590_v39, %v960_v63 }
 0xa11   :  { %v925_v4 = vadd.f32 %v1588_v7, %v924_v59 }
 0xa12   :  { %v962_v44 = vadd.f32 %v1590_v39, %v961_v25 }
 0xa13   :  { %v929_v1 = vsel %vm928_vm11, %v1588_v7, %v925_v4  ;;  %v1648_v7 = vld [vmem:[#allocation6 + $0x10] sm:$0xff] }
 0xa14   :  { %v934_v5 = vsel %vm931_vm0, %v933_v42, %v929_v1  ;;  %v966_v17 = vsel %vm965_vm7, %v1590_v39, %v962_v44  ;;  %v141_v39 = vpop.f32.mrf.mxu0 }
 0xa15   :  { %v971_v9 = vsel %vm968_vm13, %v970_v52, %v966_v17  ;;  %v937_v26 = vmul.f32 %v934_v5, %v2265_v23 }
 0xa16   :  { %v974_v35 = vmul.f32 %v971_v9, %v2276_v34 }
 0xa6c   :  { %v940_v8 = vpop.permute.xlu0 %939 }
 0xa6d   :  { %v942_v46 = vmul.f32 %v940_v8, %v934_v5 }
 0xa6f   :  { %944 = vrot.lane.b32.xlu2 %v942_v46, %s1733_s28 }
 0xa73   :  { %v977_v20 = vpop.permute.xlu1 %976 }
 0xa74   :  { %v979_v60 = vmul.f32 %v977_v20, %v971_v9 }
 0xa76   :  { %981 = vrot.lane.b32.xlu0 %v979_v60, %s1733_s28 }
 0xac9   :  { %v945_v53 = vpop.permute.xlu2 %944 }
 0xaca   :  { %v2268_v31 = vadd.f32 %v945_v53, %v937_v26 }
 0xacc   :  { %1591 = vtanh.f32 %v2268_v31 }
 0xad2   :  { %v1592_v54 = vpop.eup %1591 }
 0xad3   :  { %950 = vrot.lane.b32.xlu1 %v1592_v54, %s1734_s0 }
 0xae8   :  { %v982_v29 = vpop.permute.xlu0 %981 }
 0xae9   :  { %v2279_v3 = vadd.f32 %v982_v29, %v974_v35 }
 0xaeb   :  { %1593 = vtanh.f32 %v2279_v3 }
 0xaf1   :  { %v1594_v40 = vpop.eup %1593 }
 0xaf2   :  { %987 = vrot.lane.b32.xlu2 %v1594_v40, %s1734_s0 }
 0xb45   :  { %v951_v16 = vpop.permute.xlu1 %950 }
 0xb46   :  { %v953_v11 = vmul.f32 %v951_v16, %v934_v5 }
 0xb48   :  { %vm991_vm13 = vcmp.ne.f32.partialorder %v953_v11, 0.0  ;;  %v2286_v12 = vsel %vm854_vm3, %v953_v11, %v2201_v47 }
 0xb49   :  { %vm992_vm9 = vmand %vm854_vm3, %vm991_vm13  ;;  %1005 = vrot.lane.b32.xlu0 %v2286_v12, %s1733_s28 }
 0xb4a   :  { %v993_v38 = vsel %vm992_vm9, %v953_v11, -1e+09 }
 0xb4b   :  { %v2293_v13 = vmax.f32 %v2208_v45, %v993_v38 }
 0xb4c   :  { %v988_v14 = vpop.permute.xlu2 %987 }
 0xb4d   :  { %v990_v15 = vmul.f32 %v988_v14, %v971_v9 }
 0xb4f   :  { %vm994_vm10 = vcmp.ne.f32.partialorder %v990_v15, 0.0  ;;  %v2298_v48 = vsel %vm846_vm15, %v990_v15, %v2216_v58 }
 0xb50   :  { %vm995_vm11 = vmand %vm846_vm15, %vm994_vm10  ;;  %1032 = vrot.lane.b32.xlu1 %v2298_v48, %s1733_s28 }
 0xb51   :  { %v996_v47 = vsel %vm995_vm11, %v990_v15, -1e+09 }
 0xb52   :  { %v2305_v51 = vmax.f32 %v2223_v21, %v996_v47  ;;  %v1649_v21 = vld [vmem:[#allocation6 + $0x8] sm:$0xff]  ;;  %v2323_v47 = vsel %vm854_vm3, %v2268_v31, %v2265_v23 }
 0xbbb   :  { %v1006_v45 = vpop.permute.xlu0 %1005 }
 0xbbc   :  { %1491 = vmatmul.msk.f32.vlgmr.msrb.gmra.mxu2 %vm224_vm1, %v1006_v45 }
 0xbbd   :  { %1301 = vmatpush.msrb.mxu2 %v2229_v56  ;;  %v142_v56 = vadd.f32 %v141_v39, %v1927_v28 }
 0xbbf   :  { %1302 = vmatpush.msrb.mxu2 %v2235_v19 }
 0xbc1   :  { %1303 = vmatpush.msrb.mxu2 %v2241_v43 }
 0xbc2   :  { %v1033_v58 = vpop.permute.xlu1 %1032 }
 0xbc3   :  { %1492 = vmatmul.msk.f32.vlgmr.msrb.gmra.mxu3 %vm224_vm1, %v1033_v58  ;;  %1304 = vmatpush.msrb.mxu2 %v2248_v41 }
 0xbc4   :  { %1328 = vmatpush.msrb.mxu3 %v1647_v2 }
 0xbc6   :  { %1329 = vmatpush.msrb.mxu3 %v1648_v7  ;;  %v2333_v7 = vsel %vm846_vm15, %v2279_v3, %v2276_v34 }
 0xbc8   :  { %1330 = vmatpush.msrb.mxu3 %v1649_v21 }
 0xbca   :  { %1331 = vmatpush.msrb.mxu3 %v1650_v55 }
 0xc3f   :  { %v1026_v0 = vpop.f32.mrf.mxu2 }
 0xc40   :  { %v1029_v19 = vadd.f32 %v1026_v0, %v142_v56 }
 0xc42   :  { %1595 = vtanh.f32 %v1029_v19  ;;  %v1493_v63 = vmul.f32 -1.442695, %v1029_v19 }
 0xc46   :  { %v1053_v43 = vpop.f32.mrf.mxu3 }
 0xc47   :  { %v1056_v57 = vadd.f32 %v1053_v43, %v1932_v36 }
 0xc48   :  { %v1596_v59 = vpop.eup %1595 }
 0xc49   :  { %1597 = vtanh.f32 %v1056_v57  ;;  %1079 = vrot.lane.b32.xlu2 %v1596_v59, %s1734_s0  ;;  %v1494_v42 = vmul.f32 -1.442695, %v1056_v57 }
 0xc4a   :  { %1599 = vpow2.f32 %v1493_v63 }
 0xc4f   :  { %v1598_v41 = vpop.eup %1597 }
 0xc50   :  { %1116 = vrot.lane.b32.xlu0 %v1598_v41, %s1734_s0  ;;  %v1600_v4 = vpop.eup %1599  ;;  %v144_v41 = vpop.f32.mrf.mxu0 }
 0xc51   :  { %v1060_v22 = vadd.f32 1.0, %v1600_v4 }
 0xc53   :  { %1601 = vrcp.f32 %v1060_v22  ;;  %v1072_v36 = vand.u32 2147483648, %v1060_v22  ;;  %vm1066_vm2 = vweird.f32 %v1060_v22  ;;  %v1070_v44 = vand.u32 2147483647, %v1060_v22 }
 0xc54   :  { %1603 = vpow2.f32 %v1494_v42 }
 0xc55   :  { %v1073_v10 = vor.u32 1.1754944e-38, %v1072_v36  ;;  %vm1071_vm7 = vcmp.eq.f32.partialorder %v1070_v44, 8.507059e+37 }
 0xc59   :  { %v1602_v6 = vpop.eup %1601 }
 0xc5a   :  { %v1062_v25 = vmul.f32 %v1602_v6, %v1060_v22  ;;  %vm1067_vm0 = vweird.f32 %v1602_v6  ;;  %v1604_v46 = vpop.eup %1603 }
 0xc5b   :  { %vm1068_vm6 = vmor %vm1066_vm2, %vm1067_vm0  ;;  %v1097_v17 = vadd.f32 1.0, %v1604_v46 }
 0xc5c   :  { %v1063_v1 = vsub.f32 1.0, %v1062_v25 }
 0xc5d   :  { %1605 = vrcp.f32 %v1097_v17  ;;  %v1109_v29 = vand.u32 2147483648, %v1097_v17  ;;  %vm1103_vm9 = vweird.f32 %v1097_v17  ;;  %v1107_v40 = vand.u32 2147483647, %v1097_v17 }
 0xc5e   :  { %v1064_v5 = vmul.f32 %v1602_v6, %v1063_v1 }
 0xc5f   :  { %v1110_v11 = vor.u32 1.1754944e-38, %v1109_v29  ;;  %vm1108_vm11 = vcmp.eq.f32.partialorder %v1107_v40, 8.507059e+37 }
 0xc60   :  { %v1065_v8 = vadd.f32 %v1602_v6, %v1064_v5 }
 0xc62   :  { %v1069_v37 = vsel %vm1068_vm6, %v1602_v6, %v1065_v8 }
 0xc63   :  { %v1074_v20 = vsel %vm1071_vm7, %v1073_v10, %v1069_v37  ;;  %v1606_v60 = vpop.eup %1605 }
 0xc64   :  { %v1099_v26 = vmul.f32 %v1606_v60, %v1097_v17  ;;  %vm1104_vm13 = vweird.f32 %v1606_v60  ;;  %v1077_v45 = vmul.f32 %v1074_v20, %v2323_v47 }
 0xc65   :  { %vm1105_vm10 = vmor %vm1103_vm9, %vm1104_vm13 }
 0xc66   :  { %v1100_v53 = vsub.f32 1.0, %v1099_v26 }
 0xc68   :  { %v1101_v54 = vmul.f32 %v1606_v60, %v1100_v53 }
 0xc6a   :  { %v1102_v35 = vadd.f32 %v1606_v60, %v1101_v54 }
 0xc6c   :  { %v1106_v16 = vsel %vm1105_vm10, %v1606_v60, %v1102_v35 }
 0xc6d   :  { %v1111_v38 = vsel %vm1108_vm11, %v1110_v11, %v1106_v16 }
 0xc6e   :  { %v1114_v21 = vmul.f32 %v1111_v38, %v2333_v7 }
 0xca3   :  { %v1080_v52 = vpop.permute.xlu2 %1079 }
 0xca4   :  { %v1082_v9 = vmul.f32 %v1080_v52, %v1074_v20 }
 0xca6   :  { %1084 = vrot.lane.b32.xlu1 %v1082_v9, %s1733_s28 }
 0xcc2   :  { %v1117_v14 = vpop.permute.xlu0 %1116 }
 0xcc3   :  { %v1119_v15 = vmul.f32 %v1117_v14, %v1111_v38 }
 0xcc5   :  { %1121 = vrot.lane.b32.xlu2 %v1119_v15, %s1733_s28 }
 0xd18   :  { %v1085_v58 = vpop.permute.xlu1 %1084 }
 0xd19   :  { %v2326_v2 = vadd.f32 %v1085_v58, %v1077_v45 }
 0xd1b   :  { %1607 = vtanh.f32 %v2326_v2 }
 0xd1f   :  { %v1122_v55 = vpop.permute.xlu2 %1121 }
 0xd20   :  { %v2336_v39 = vadd.f32 %v1122_v55, %v1114_v21 }
 0xd21   :  { %v1608_v18 = vpop.eup %1607 }
 0xd22   :  { %1609 = vtanh.f32 %v2336_v39  ;;  %1090 = vrot.lane.b32.xlu0 %v1608_v18, %s1734_s0  ;;  %v2377_v18 = vsel %vm696_vm8, %v2326_v2, %v2323_v47 }
 0xd28   :  { %v1610_v23 = vpop.eup %1609 }
 0xd29   :  { %1127 = vrot.lane.b32.xlu1 %v1610_v23, %s1734_s0 }
 0xd94   :  { %v1091_v31 = vpop.permute.xlu0 %1090 }
 0xd95   :  { %v1093_v56 = vmul.f32 %v1091_v31, %v1074_v20 }
 0xd97   :  { %vm1131_vm3 = vcmp.ne.f32.partialorder %v1093_v56, 0.0  ;;  %v2344_v30 = vsel %vm696_vm8, %v1093_v56, %v2286_v12 }
 0xd98   :  { %vm1132_vm15 = vmand %vm696_vm8, %vm1131_vm3  ;;  %1145 = vrot.lane.b32.xlu2 %v2344_v30, %s1733_s28 }
 0xd99   :  { %v1133_v34 = vsel %vm1132_vm15, %v1093_v56, -1e+09 }
 0xd9a   :  { %v2351_v3 = vmax.f32 %v2293_v13, %v1133_v34  ;;  %v2387_v34 = vsel %vm688_vm5, %v2336_v39, %v2333_v7 }
 0xd9b   :  { %v1128_v0 = vpop.permute.xlu1 %1127 }
 0xd9c   :  { %v1130_v19 = vmul.f32 %v1128_v0, %v1111_v38 }
 0xd9e   :  { %vm1134_vm0 = vcmp.ne.f32.partialorder %v1130_v19, 0.0  ;;  %v2356_v43 = vsel %vm688_vm5, %v1130_v19, %v2298_v48  ;;  %v145_v48 = vadd.f32 %v144_v41, %v1927_v28 }
 0xd9f   :  { %vm1135_vm2 = vmand %vm688_vm5, %vm1134_vm0  ;;  %1172 = vrot.lane.b32.xlu0 %v2356_v43, %s1733_s28 }
 0xda0   :  { %v1136_v12 = vsel %vm1135_vm2, %v1130_v19, -1e+09 }
 0xda1   :  { %v2363_v57 = vmax.f32 %v2305_v51, %v1136_v12 }
 0xdf2   :  { %v1146_v13 = vpop.permute.xlu2 %1145 }
 0xdf3   :  { %1495 = vmatmul.msk.f32.vlgmr.msra.gmra.mxu2 %vm224_vm1, %v1146_v13 }
 0xe11   :  { %v1173_v59 = vpop.permute.xlu0 %1172 }
 0xe12   :  { %1496 = vmatmul.msk.f32.vlgmr.msra.gmra.mxu3 %vm224_vm1, %v1173_v59 }
 0xe76   :  { %v1166_v63 = vpop.f32.mrf.mxu2 }
 0xe77   :  { %v1169_v4 = vadd.f32 %v1166_v63, %v145_v48 }
 0xe79   :  { %1611 = vtanh.f32 %v1169_v4  ;;  %v1497_v1 = vmul.f32 -1.442695, %v1169_v4 }
 0xe7f   :  { %v1612_v22 = vpop.eup %1611 }
 0xe80   :  { %1219 = vrot.lane.b32.xlu1 %v1612_v22, %s1734_s0  ;;  %v147_v22 = vpop.f32.mrf.mxu0 }
 0xe95   :  { %v1193_v6 = vpop.f32.mrf.mxu3 }
 0xe96   :  { %v1196_v25 = vadd.f32 %v1193_v6, %v1930_v32  ;;  %v148_v6 = vadd.f32 %v147_v22, %v1927_v28 }
 0xe98   :  { %1613 = vtanh.f32 %v1196_v25  ;;  %v1498_v42 = vmul.f32 -1.442695, %v1196_v25 }
 0xe99   :  { %1615 = vpow2.f32 %v1497_v1 }
 0xe9a   :  { %1617 = vpow2.f32 %v1498_v42 }
 0xe9e   :  { %v1614_v51 = vpop.eup %1613 }
 0xe9f   :  { %1256 = vrot.lane.b32.xlu2 %v1614_v51, %s1734_s0  ;;  %v1616_v5 = vpop.eup %1615 }
 0xea0   :  { %v1200_v8 = vadd.f32 1.0, %v1616_v5  ;;  %v1618_v36 = vpop.eup %1617 }
 0xea1   :  { %v1237_v44 = vadd.f32 1.0, %v1618_v36 }
 0xea2   :  { %1619 = vrcp.f32 %v1200_v8  ;;  %v1212_v60 = vand.u32 2147483648, %v1200_v8  ;;  %vm1206_vm7 = vweird.f32 %v1200_v8  ;;  %v1210_v26 = vand.u32 2147483647, %v1200_v8 }
 0xea3   :  { %1621 = vrcp.f32 %v1237_v44  ;;  %v1249_v38 = vand.u32 2147483648, %v1237_v44  ;;  %vm1243_vm11 = vweird.f32 %v1237_v44  ;;  %v1247_v14 = vand.u32 2147483647, %v1237_v44 }
 0xea4   :  { %v1213_v35 = vor.u32 1.1754944e-38, %v1212_v60  ;;  %vm1211_vm9 = vcmp.eq.f32.partialorder %v1210_v26, 8.507059e+37 }
 0xea5   :  { %v1250_v45 = vor.u32 1.1754944e-38, %v1249_v38  ;;  %vm1248_vm15 = vcmp.eq.f32.partialorder %v1247_v14, 8.507059e+37 }
 0xea8   :  { %v1620_v46 = vpop.eup %1619 }
 0xea9   :  { %v1202_v37 = vmul.f32 %v1620_v46, %v1200_v8  ;;  %v1622_v10 = vpop.eup %1621  ;;  %vm1207_vm6 = vweird.f32 %v1620_v46 }
 0xeaa   :  { %v1239_v52 = vmul.f32 %v1622_v10, %v1237_v44  ;;  %vm1208_vm13 = vmor %vm1206_vm7, %vm1207_vm6  ;;  %vm1244_vm10 = vweird.f32 %v1622_v10 }
 0xeab   :  { %v1203_v17 = vsub.f32 1.0, %v1202_v37  ;;  %vm1245_vm3 = vmor %vm1243_vm11, %vm1244_vm10 }
 0xeac   :  { %v1240_v20 = vsub.f32 1.0, %v1239_v52 }
 0xead   :  { %v1204_v32 = vmul.f32 %v1620_v46, %v1203_v17 }
 0xeae   :  { %v1241_v53 = vmul.f32 %v1622_v10, %v1240_v20 }
 0xeaf   :  { %v1205_v9 = vadd.f32 %v1620_v46, %v1204_v32 }
 0xeb0   :  { %v1242_v16 = vadd.f32 %v1622_v10, %v1241_v53 }
 0xeb1   :  { %v1209_v54 = vsel %vm1208_vm13, %v1620_v46, %v1205_v9 }
 0xeb2   :  { %v1214_v40 = vsel %vm1211_vm9, %v1213_v35, %v1209_v54  ;;  %v1246_v15 = vsel %vm1245_vm3, %v1622_v10, %v1242_v16 }
 0xeb3   :  { %v1251_v21 = vsel %vm1248_vm15, %v1250_v45, %v1246_v15  ;;  %v1217_v23 = vmul.f32 %v1214_v40, %v2377_v18 }
 0xeb4   :  { %v1254_v0 = vmul.f32 %v1251_v21, %v2387_v34 }
 0xef2   :  { %v1220_v29 = vpop.permute.xlu1 %1219 }
 0xef3   :  { %v1222_v11 = vmul.f32 %v1220_v29, %v1214_v40 }
 0xef5   :  { %1224 = vrot.lane.b32.xlu0 %v1222_v11, %s1733_s28 }
 0xef9   :  { %v1257_v58 = vpop.permute.xlu2 %1256 }
 0xefa   :  { %v1259_v55 = vmul.f32 %v1257_v58, %v1251_v21 }
 0xefc   :  { %1261 = vrot.lane.b32.xlu1 %v1259_v55, %s1733_s28 }
 0xf67   :  { %v1225_v31 = vpop.permute.xlu0 %1224 }
 0xf68   :  { %v2380_v56 = vadd.f32 %v1225_v31, %v1217_v23 }
 0xf6a   :  { %1623 = vtanh.f32 %v2380_v56  ;;  %v1280_v23 = vsel %vm538_vm4, %v2380_v56, %v2377_v18 }
 0xf6e   :  { %v1262_v19 = vpop.permute.xlu1 %1261 }
 0xf6f   :  { %v2390_v12 = vadd.f32 %v1262_v19, %v1254_v0 }
 0xf70   :  { %v1624_v62 = vpop.eup %1623 }
 0xf71   :  { %1625 = vtanh.f32 %v2390_v12  ;;  %1230 = vrot.lane.b32.xlu2 %v1624_v62, %s1734_s0 }
 0xf77   :  { %v1626_v47 = vpop.eup %1625 }
 0xf78   :  { %1267 = vrot.lane.b32.xlu0 %v1626_v47, %s1734_s0  ;;  %v1282_v47 = vsel %vm530_vm14, %v2390_v12, %v2387_v34 }
 0xfcb   :  { %v1231_v2 = vpop.permute.xlu2 %1230 }
 0xfcc   :  { %v1233_v13 = vmul.f32 %v1231_v2, %v1214_v40 }
 0xfce   :  { %vm1271_vm8 = vcmp.ne.f32.partialorder %v1233_v13, 0.0  ;;  %v1279_v61 = vsel %vm538_vm4, %v1233_v13, %v2344_v30 }
 0xfcf   :  { %vm1272_vm5 = vmand %vm538_vm4, %vm1271_vm8  ;;  %1285 = vrot.lane.b32.xlu1 %v1279_v61, %s1733_s28 }
 0xfd0   :  { %v1273_v7 = vsel %vm1272_vm5, %v1233_v13, -1e+09  ;;  %vm2455_vm5 = vcmp.eq.s32.totalorder %v1978_v49, 1 }
 0xfd1   :  { %v2402_v39 = vmax.f32 %v2351_v3, %v1273_v7 }
 0xfea   :  { %v1268_v59 = vpop.permute.xlu0 %1267 }
 0xfeb   :  { %v1270_v41 = vmul.f32 %v1268_v59, %v1251_v21 }
 0xfed   :  { %vm1274_vm0 = vcmp.ne.f32.partialorder %v1270_v41, 0.0  ;;  %v1281_v48 = vsel %vm530_vm14, %v1270_v41, %v2356_v43 }
 0xfee   :  { %vm1275_vm2 = vmand %vm530_vm14, %vm1274_vm0  ;;  %1312 = vrot.lane.b32.xlu2 %v1281_v48, %s1733_s28 }
 0xfef   :  { %v1276_v30 = vsel %vm1275_vm2, %v1270_v41, -1e+09 }
 0xff0   :  { %v2411_v63 = vmax.f32 %v2363_v57, %v1276_v30 }
0x1041   :  { %v1286_v4 = vpop.permute.xlu1 %1285 }
0x1042   :  { %1499 = vmatmul.msk.f32.vlgmr.msrb.gmra.mxu2 %vm224_vm1, %v1286_v4 }
0x1048   :  { %v1313_v3 = vpop.permute.xlu2 %1312 }
0x1049   :  { %1500 = vmatmul.msk.f32.vlgmr.msrb.gmra.mxu3 %vm224_vm1, %v1313_v3 }
0x10c5   :  { %v1306_v25 = vpop.f32.mrf.mxu2 }
0x10c6   :  { %v1309_v43 = vadd.f32 %v1306_v25, %v148_v6 }
0x10c8   :  { %1627 = vtanh.f32 %v1309_v43  ;;  %v1501_v5 = vmul.f32 -1.442695, %v1309_v43 }
0x10cc   :  { %v1333_v51 = vpop.f32.mrf.mxu3 }
0x10cd   :  { %v1336_v1 = vadd.f32 %v1333_v51, %v1925_v27 }
0x10ce   :  { %v1628_v42 = vpop.eup %1627 }
0x10cf   :  { %1629 = vtanh.f32 %v1336_v1  ;;  %1359 = vrot.lane.b32.xlu0 %v1628_v42, %s1734_s0  ;;  %v1502_v8 = vmul.f32 -1.442695, %v1336_v1 }
0x10d0   :  { %1631 = vpow2.f32 %v1501_v5 }
0x10d1   :  { %1633 = vpow2.f32 %v1502_v8 }
0x10d5   :  { %v1630_v57 = vpop.eup %1629 }
0x10d6   :  { %1396 = vrot.lane.b32.xlu1 %v1630_v57, %s1734_s0  ;;  %v1632_v36 = vpop.eup %1631 }
0x10d7   :  { %v1340_v44 = vadd.f32 1.0, %v1632_v36  ;;  %v1634_v28 = vpop.eup %1633 }
0x10d8   :  { %v1377_v46 = vadd.f32 1.0, %v1634_v28 }
0x10d9   :  { %1635 = vrcp.f32 %v1340_v44  ;;  %v1352_v60 = vand.u32 2147483648, %v1340_v44  ;;  %vm1346_vm7 = vweird.f32 %v1340_v44  ;;  %v1350_v26 = vand.u32 2147483647, %v1340_v44 }
0x10da   :  { %1637 = vrcp.f32 %v1377_v46  ;;  %v1389_v38 = vand.u32 2147483648, %v1377_v46  ;;  %vm1383_vm11 = vweird.f32 %v1377_v46  ;;  %v1387_v14 = vand.u32 2147483647, %v1377_v46 }
0x10db   :  { %v1353_v35 = vor.u32 1.1754944e-38, %v1352_v60  ;;  %vm1351_vm9 = vcmp.eq.f32.partialorder %v1350_v26, 8.507059e+37 }
0x10dc   :  { %v1390_v45 = vor.u32 1.1754944e-38, %v1389_v38  ;;  %vm1388_vm15 = vcmp.eq.f32.partialorder %v1387_v14, 8.507059e+37 }
0x10df   :  { %v1636_v37 = vpop.eup %1635 }
0x10e0   :  { %v1342_v10 = vmul.f32 %v1636_v37, %v1340_v44  ;;  %v1638_v27 = vpop.eup %1637  ;;  %vm1347_vm6 = vweird.f32 %v1636_v37 }
0x10e1   :  { %v1379_v52 = vmul.f32 %v1638_v27, %v1377_v46  ;;  %vm1348_vm13 = vmor %vm1346_vm7, %vm1347_vm6  ;;  %vm1384_vm10 = vweird.f32 %v1638_v27 }
0x10e2   :  { %v1343_v17 = vsub.f32 1.0, %v1342_v10  ;;  %vm1385_vm3 = vmor %vm1383_vm11, %vm1384_vm10 }
0x10e3   :  { %v1380_v20 = vsub.f32 1.0, %v1379_v52 }
0x10e4   :  { %v1344_v32 = vmul.f32 %v1636_v37, %v1343_v17 }
0x10e5   :  { %v1381_v53 = vmul.f32 %v1638_v27, %v1380_v20 }
0x10e6   :  { %v1345_v9 = vadd.f32 %v1636_v37, %v1344_v32 }
0x10e7   :  { %v1382_v16 = vadd.f32 %v1638_v27, %v1381_v53 }
0x10e8   :  { %v1349_v54 = vsel %vm1348_vm13, %v1636_v37, %v1345_v9 }
0x10e9   :  { %v1354_v29 = vsel %vm1351_vm9, %v1353_v35, %v1349_v54  ;;  %v1386_v15 = vsel %vm1385_vm3, %v1638_v27, %v1382_v16 }
0x10ea   :  { %v1391_v21 = vsel %vm1388_vm15, %v1390_v45, %v1386_v15  ;;  %v1357_v31 = vmul.f32 %v1354_v29, %v1280_v23 }
0x10eb   :  { %v1394_v2 = vmul.f32 %v1391_v21, %v1282_v47 }
0x1141   :  { %v1360_v40 = vpop.permute.xlu0 %1359 }
0x1142   :  { %v1362_v11 = vmul.f32 %v1360_v40, %v1354_v29 }
0x1144   :  { %1364 = vrot.lane.b32.xlu2 %v1362_v11, %s1733_s28 }
0x1148   :  { %v1397_v58 = vpop.permute.xlu1 %1396 }
0x1149   :  { %v1399_v55 = vmul.f32 %v1397_v58, %v1391_v21 }
0x114b   :  { %1401 = vrot.lane.b32.xlu0 %v1399_v55, %s1733_s28 }
0x119e   :  { %v1365_v0 = vpop.permute.xlu2 %1364 }
0x119f   :  { %v1367_v19 = vadd.f32 %v1365_v0, %v1357_v31 }
0x11a1   :  { %1639 = vtanh.f32 %v1367_v19 }
0x11a7   :  { %v1640_v62 = vpop.eup %1639 }
0x11a8   :  { %1370 = vrot.lane.b32.xlu1 %v1640_v62, %s1734_s0 }
0x11bd   :  { %v1402_v13 = vpop.permute.xlu0 %1401 }
0x11be   :  { %v1404_v61 = vadd.f32 %v1402_v13, %v1394_v2 }
0x11c0   :  { %1641 = vtanh.f32 %v1404_v61 }
0x11c6   :  { %v1642_v7 = vpop.eup %1641 }
0x11c7   :  { %1407 = vrot.lane.b32.xlu2 %v1642_v7, %s1734_s0 }
0x121a   :  { %v1371_v24 = vpop.permute.xlu1 %1370 }
0x121b   :  { %v1373_v18 = vmul.f32 %v1371_v24, %v1354_v29 }
0x121d   :  { %vm1411_vm4 = vcmp.ne.f32.partialorder %v1373_v18, 0.0 }
0x121e   :  { %vm1412_vm8 = vmand %vm374_vm12, %vm1411_vm4  ;;  %vm1428_vm12 = vcmask 523520  }
0x121f   :  { %v1413_v56 = vsel %vm1412_vm8, %v1373_v18, -1e+09 }
0x1220   :  { %v1417_v59 = vmax.f32 %v2402_v39, %v1413_v56 }
0x1221   :  { %v1408_v41 = vpop.permute.xlu2 %1407 }
0x1222   :  { %v1410_v48 = vmul.f32 %v1408_v41, %v1391_v21  ;;  %1420 = vrot.lane.b32.xlu0 %v1417_v59, %s1733_s28 }
0x1224   :  { %vm1414_vm14 = vcmp.ne.f32.partialorder %v1410_v48, 0.0 }
0x1225   :  { %vm1415_vm0 = vmand %vm2455_vm5, %vm1414_vm14 }
0x1226   :  { %v1416_v33 = vsel %vm1415_vm0, %v1410_v48, -1e+09 }
0x1227   :  { %v1418_v34 = vmax.f32 %v2411_v63, %v1416_v33 }
0x1229   :  { %1425 = vrot.lane.b32.xlu1 %v1418_v34, %s1734_s0 }
0x1294   :  { %v1421_v12 = vpop.permute.xlu0 %1420 }
0x1295   :  { %1423 = vst.msk [vmem:[#allocation8] sm:$0xff] %vm224_vm1, %v1421_v12 }
0x129b   :  { %v1426_v50 = vpop.permute.xlu1 %1425 }
0x129c   :  { %1429 = vst.msk [vmem:[#allocation8] sm:$0xff] %vm1428_vm12, %v1426_v50 }
0x129d   :  { %1440 = dma.vmem_to_hbm [thread:$0]  %s1436_s3, 128, %s1438_s27, [#allocation5]  }
0x129e   :  { %1727 = dma.done.wait [#allocation5], 128  }
0x129f   :  { %1728 = vsyncadd [#allocation5], 4294967168 }
0x12a0   :  { %1445 = vsyncpa [#allocation4], 1 }
0x12a1   :  { %1446 = vsyncpa [#allocation7], 1 }
0x12a2   :  { %1447 = vsyncpa [#allocation5], 1 }

</bundles_post_ra>
